<compile_context>
chip_gen: v7x
topology: tpu7x:2x2x1
jax: 0.10.0
libtpu: 0.0.40
codegen_flags: <defaults>
</compile_context>

<pallas_src>
import functools
import math

import jax
import jax.numpy as jnp
from jax import lax
from jax.experimental import pallas as pl
from jax.experimental.pallas import tpu as pltpu

LOWER_MARGIN = 0.35
UPPER_MARGIN = 0.75
LOWER_BOUND = 0.0
UPPER_BOUND = 90.0
MARGIN_SLOPE = (UPPER_MARGIN - LOWER_MARGIN) / (UPPER_BOUND - LOWER_BOUND)
PI = math.pi
NORM_EPS = 1e-12      # F.normalize eps
COS_CLIP = 1e-7       # acos clamp


def _main_kernel(s_ref, f_ref, w_ref, lab_ref,
                 pre_ref, tcos_ref, tphi_ref, erow_ref):
    """One (batch-tile, class-tile) step of the Magface pre-logit computation."""
    j = pl.program_id(1)                      # class-tile index (reduction axis)
    s_old = s_ref[0, 0]

    f = f_ref[...]                            # (B_T, D) f32
    w = w_ref[...]                            # (C_T, D) f32
    lab = lab_ref[...]                        # (B_T, 1) i32
    b_t, c_t = pre_ref.shape

    # ---- feature magnitude & magnitude-aware adaptive margin (per row) ----
    mag = jnp.sqrt(jnp.sum(f * f, axis=1, keepdims=True))            # (B_T, 1)
    inv_mag = pl.reciprocal(jnp.maximum(mag, NORM_EPS), approx=True)
    mag_c = jnp.clip(mag, LOWER_BOUND, UPPER_BOUND)
    margin = MARGIN_SLOPE * (mag_c - LOWER_BOUND) + LOWER_MARGIN
    cos_m = jnp.cos(margin)
    sin_m = jnp.sin(margin)
    # NOTE: th/mm of the reference only matter when EasyMargin=False; the module
    # hard-codes EasyMargin=True, so they are omitted.

    # ---- per-class weight-norm reciprocal (this class tile only) ----
    w_norm = jnp.sqrt(jnp.sum(w * w, axis=1, keepdims=True))          # (C_T, 1)
    inv_w = pl.reciprocal(jnp.maximum(w_norm, NORM_EPS), approx=True)

    # ---- cosine tile on the MXU: normalization fused into the bf16 casts ----
    fn = (f * inv_mag).astype(jnp.bfloat16)
    wn = (w * inv_w).astype(jnp.bfloat16)
    cosine = lax.dot_general(fn, wn, (((1,), (1,)), ((), ())),
                             preferred_element_type=jnp.float32)      # (B_T, C_T)

    # ---- one hot for this class tile (built once, used twice) ----
    cls = lax.broadcasted_iota(jnp.int32, (b_t, c_t), 1) + j * c_t
    one_hot = (cls == lab).astype(jnp.float32)

    # ---- target-column math only (B_T, 1): phi / easy-margin select ----
    tgt = jnp.sum(one_hot * cosine, axis=1, keepdims=True)   # 0 if target not in tile
    sin_t = jnp.sqrt(jnp.clip(1.0 - tgt * tgt, 0.0, 1.0))
    phi_t = tgt * cos_m - sin_t * sin_m
    phi_t = jnp.where(tgt > 0.0, phi_t, tgt)  # EasyMargin=True; stays 0 off-tile

    # ---- per-row sum of exp(S_old * cosine) (target removed later in glue) ----
    erow = jnp.sum(jnp.exp(s_old * cosine), axis=1, keepdims=True)

    # ---- margin-modified pre-logits: only the target column changes ----
    pre_ref[...] = (cosine + one_hot * (phi_t - tgt)).astype(pre_ref.dtype)

    # ---- accumulate per-row partials across class tiles (resident blocks) ----
    @pl.when(j == 0)
    def _():
        tcos_ref[...] = jnp.zeros(tcos_ref.shape, tcos_ref.dtype)
        tphi_ref[...] = jnp.zeros(tphi_ref.shape, tphi_ref.dtype)
        erow_ref[...] = jnp.zeros(erow_ref.shape, erow_ref.dtype)

    tcos_ref[...] += tgt
    tphi_ref[...] += phi_t
    erow_ref[...] += erow


def _ce_kernel(s_ref, pre_ref, lse_ref, m_sc, l_sc):
    """Online (class-tiled) per-row log-sum-exp of S * pre_logits."""
    j = pl.program_id(1)
    s = s_ref[0, 0]

    @pl.when(j == 0)
    def _():
        m_sc[...] = jnp.full(m_sc.shape, -jnp.inf, m_sc.dtype)
        l_sc[...] = jnp.zeros(l_sc.shape, l_sc.dtype)

    logits = pre_ref[...].astype(jnp.float32) * s                      # (B_T, C_T)
    m_new = jnp.maximum(m_sc[...], jnp.max(logits, axis=1, keepdims=True))
    alpha = jnp.exp(m_sc[...] - m_new)
    l_sc[...] = alpha * l_sc[...] + jnp.sum(jnp.exp(logits - m_new),
                                            axis=1, keepdims=True)
    m_sc[...] = m_new

    @pl.when(j == pl.num_programs(1) - 1)
    def _():
        lse_ref[...] = m_sc[...] + jnp.log(l_sc[...])


def _pick_tile(total, pref, quantum):
    """Largest divisor of `total` that is a multiple of `quantum` and <= pref."""
    if total <= pref:
        return total
    best = None
    t = quantum
    while t <= pref:
        if total % t == 0:
            best = t
        t += quantum
    return best if best is not None else total


def ada_magface_loss(features, labels, weights, s_old, s_max,
                     *, b_tile=256, c_tile=1024):
    """Returns (loss, new_S) matching AdaMagfaceLoss.forward (EasyMargin=True)."""
    B, D = features.shape
    C = weights.shape[0]
    b_t = _pick_tile(B, b_tile, 16)     # 16-row quantum (bf16 sublane tile)
    c_t = _pick_tile(C, c_tile, 128)    # lane-dense class tiles
    nbt, nct = B // b_t, C // c_t

    lab2d = labels.astype(jnp.int32).reshape(B, 1)
    s_old_arr = jnp.asarray(s_old, jnp.float32).reshape(1, 1)

    cparams = pltpu.CompilerParams(
        dimension_semantics=("parallel", "arbitrary"),
        vmem_limit_bytes=32 * 1024 * 1024)

    pre_logits, tgt_cos, tgt_phi, erow = pl.pallas_call(
        _main_kernel,
        grid=(nbt, nct),
        out_shape=(
            jax.ShapeDtypeStruct((B, C), jnp.bfloat16),   # margin-modified pre-logits
            jax.ShapeDtypeStruct((B, 1), jnp.float32),    # target cosine (per row)
            jax.ShapeDtypeStruct((B, 1), jnp.float32),    # target phi    (per row)
            jax.ShapeDtypeStruct((B, 1), jnp.float32),    # sum_c exp(S_old*cos)
        ),
        in_specs=[
            pl.BlockSpec(memory_space=pltpu.MemorySpace.SMEM),     # S_old (1,1)
            pl.BlockSpec((b_t, D), lambda i, j: (i, 0)),           # features
            pl.BlockSpec((c_t, D), lambda i, j: (j, 0)),           # weights
            pl.BlockSpec((b_t, 1), lambda i, j: (i, 0)),           # labels
        ],
        out_specs=(
            pl.BlockSpec((b_t, c_t), lambda i, j: (i, j)),
            pl.BlockSpec((b_t, 1), lambda i, j: (i, 0)),
            pl.BlockSpec((b_t, 1), lambda i, j: (i, 0)),
            pl.BlockSpec((b_t, 1), lambda i, j: (i, 0)),
        ),
        compiler_params=cparams,
        cost_estimate=pl.CostEstimate(
            flops=int(2 * B * C * D + 8 * B * C),
            transcendentals=int(B * C + 6 * B + C),
            bytes_accessed=int(4 * (B * D + C * D + 4 * B) + 2 * B * C)),
    )(s_old_arr, features, weights, lab2d)

    # ---- adaptive-scale update (the torch.no_grad block): tiny scalar glue ----
    b_avg = (jnp.sum(erow) - jnp.sum(jnp.exp(s_old * tgt_cos))) / B
    theta = jnp.arccos(jnp.clip(tgt_cos[:, 0], -1.0 + COS_CLIP, 1.0 - COS_CLIP))
    # torch.median of an even-length vector returns the LOWER middle element.
    theta_med = jnp.sort(theta)[(B - 1) // 2]
    s_new = jnp.log(b_avg) / jnp.cos(jnp.minimum(jnp.float32(PI / 4.0), theta_med))
    s_new = jnp.minimum(s_new, jnp.float32(s_max)).astype(jnp.float32)

    # ---- scaled cross-entropy: class-tiled online LSE (no one_hot needed) ----
    lse = pl.pallas_call(
        _ce_kernel,
        grid=(nbt, nct),
        out_shape=jax.ShapeDtypeStruct((B, 1), jnp.float32),
        in_specs=[
            pl.BlockSpec(memory_space=pltpu.MemorySpace.SMEM),     # S_new (1,1)
            pl.BlockSpec((b_t, c_t), lambda i, j: (i, j)),         # pre-logits bf16
        ],
        out_specs=pl.BlockSpec((b_t, 1), lambda i, j: (i, 0)),
        scratch_shapes=[pltpu.VMEM((b_t, 1), jnp.float32),
                        pltpu.VMEM((b_t, 1), jnp.float32)],
        compiler_params=cparams,
        cost_estimate=pl.CostEstimate(
            flops=int(4 * B * C),
            transcendentals=int(B * C),
            bytes_accessed=int(2 * B * C + 4 * B)),
    )(s_new.reshape(1, 1), pre_logits)

    # mean(lse - target_logit); target pre-logit carried in f32 from kernel 1.
    loss = jnp.mean(lse[:, 0] - s_new * tgt_phi[:, 0])
    return loss, s_new


# ---------------------------------------------------------------------------
# Pure-JAX reference (mirrors the PyTorch forward) for a sanity check.
# ---------------------------------------------------------------------------
def _reference(features, labels, weights, s_old, s_max):
    B = features.shape[0]
    C = weights.shape[0]
    mag = jnp.linalg.norm(features, axis=1, keepdims=True)
    mag_c = jnp.clip(mag, LOWER_BOUND, UPPER_BOUND)
    margin = MARGIN_SLOPE * (mag_c - LOWER_BOUND) + LOWER_MARGIN
    cos_m, sin_m = jnp.cos(margin), jnp.sin(margin)
    fn_ = features / jnp.maximum(mag, NORM_EPS)
    wn_ = weights / jnp.maximum(
        jnp.linalg.norm(weights, axis=1, keepdims=True), NORM_EPS)
    cosine = fn_ @ wn_.T
    theta = jnp.arccos(jnp.clip(cosine, -1.0 + COS_CLIP, 1.0 - COS_CLIP))
    sine = jnp.sqrt(jnp.clip(1.0 - cosine ** 2, 0.0, 1.0))
    one_hot = jax.nn.one_hot(labels, C, dtype=jnp.float32)
    b_avg = jnp.sum(jnp.where(one_hot < 1.0, jnp.exp(s_old * cosine), 0.0)) / B
    tgt_theta = theta[jnp.arange(B), labels]
    theta_med = jnp.sort(tgt_theta)[(B - 1) // 2]
    s_new = jnp.log(b_avg) / jnp.cos(jnp.minimum(jnp.float32(PI / 4), theta_med))
    s_new = jnp.minimum(s_new, jnp.float32(s_max))
    phi = cosine * cos_m - sine * sin_m
    phi = jnp.where(cosine > 0.0, phi, cosine)
    logits = (one_hot * phi + (1.0 - one_hot) * cosine) * s_new
    lse = jax.scipy.special.logsumexp(logits, axis=1)
    loss = jnp.mean(lse - logits[jnp.arange(B), labels])
    return loss, s_new


if __name__ == "__main__":
    # Small shapes consistent with the module, chosen to exercise a real
    # (batch-tile x class-tile) = (2, 2) grid: batch=32, InputFeatures=64,
    # NumClasses=256 with b_tile=16, c_tile=128.
    B, D, C = 32, 64, 256

    key = jax.random.PRNGKey(0)
    k_feat, k_lab, k_w = jax.random.split(key, 3)

    features = jax.random.normal(k_feat, (B, D), dtype=jnp.float32)
    labels = jax.random.randint(k_lab, (B,), 0, C, dtype=jnp.int32)

    # xavier_uniform_ init for weights (NumClasses, InputFeatures).
    bound = math.sqrt(6.0 / (D + C))
    weights = jax.random.uniform(k_w, (C, D), dtype=jnp.float32,
                                 minval=-bound, maxval=bound)

    # Initial scale S and cap S_Max, as in __init__.
    s_init = math.sqrt(2.0)
    if C > 1:
        s_init = s_init * math.log(C - 1)
    s_max = math.sqrt(2.0) * s_init

    fn = jax.jit(functools.partial(ada_magface_loss, s_max=s_max,
                                   b_tile=16, c_tile=128))
    loss, s_new = fn(features, labels, weights, s_init)
    loss, s_new = jax.block_until_ready((loss, s_new))

    loss_ref, s_new_ref = _reference(features, labels, weights, s_init, s_max)
    # bf16 MXU operands + bf16 pre-logit storage => slightly looser tolerance.
    assert jnp.allclose(loss, loss_ref, rtol=2e-2, atol=2e-2), (loss, loss_ref)
    assert jnp.allclose(s_new, s_new_ref, rtol=2e-2, atol=2e-2), (s_new, s_new_ref)

    print("KERNEL_OK")
</pallas_src>

<mosaic_0001>
module attributes {stable_mosaic.version = 11 : i64} {
  func.func @_main_kernel(%arg0: i32, %arg1: i32, %arg2: memref<1x1xf32, #tpu.memory_space<smem>>, %arg3: memref<16x64xf32, #tpu.memory_space<vmem>>, %arg4: memref<128x64xf32, #tpu.memory_space<vmem>>, %arg5: memref<16x1xi32, #tpu.memory_space<vmem>>, %arg6: memref<16x128xbf16, #tpu.memory_space<vmem>>, %arg7: memref<16x1xf32, #tpu.memory_space<vmem>>, %arg8: memref<16x1xf32, #tpu.memory_space<vmem>>, %arg9: memref<16x1xf32, #tpu.memory_space<vmem>>) attributes {dimension_semantics = [#tpu.dimension_semantics<parallel>, #tpu.dimension_semantics<arbitrary>], iteration_bounds = array<i64: 2, 2>, scalar_prefetch = 0 : i64, scratch_operands = 0 : i64, tpu.core_type = #tpu.core_type<tc>, window_params = [{transform_indices = @transform_0, window_bounds = array<i64: 1, 1>}, {transform_indices = @transform_1, window_bounds = array<i64: 16, 64>}, {transform_indices = @transform_2, window_bounds = array<i64: 128, 64>}, {transform_indices = @transform_3, window_bounds = array<i64: 16, 1>}, {transform_indices = @transform_4, window_bounds = array<i64: 16, 128>}, {transform_indices = @transform_5, window_bounds = array<i64: 16, 1>}, {transform_indices = @transform_6, window_bounds = array<i64: 16, 1>}, {transform_indices = @transform_7, window_bounds = array<i64: 16, 1>}]} {
    %c0 = arith.constant 0 : index
    %c0_0 = arith.constant 0 : index
    %0 = memref.load %arg2[%c0, %c0_0] : memref<1x1xf32, #tpu.memory_space<smem>>
    %c0_1 = arith.constant 0 : index
    %c0_2 = arith.constant 0 : index
    %1 = vector.load %arg3[%c0_1, %c0_2] : memref<16x64xf32, #tpu.memory_space<vmem>>, vector<16x64xf32>
    %c0_3 = arith.constant 0 : index
    %c0_4 = arith.constant 0 : index
    %2 = vector.load %arg4[%c0_3, %c0_4] : memref<128x64xf32, #tpu.memory_space<vmem>>, vector<128x64xf32>
    %c0_5 = arith.constant 0 : index
    %c0_6 = arith.constant 0 : index
    %3 = vector.load %arg5[%c0_5, %c0_6] : memref<16x1xi32, #tpu.memory_space<vmem>>, vector<16x1xi32>
    %4 = arith.mulf %1, %1 : vector<16x64xf32>
    %cst = arith.constant dense<0.000000e+00> : vector<16xf32>
    %5 = vector.multi_reduction <add>, %4, %cst [1] : vector<16x64xf32> to vector<16xf32>
    %6 = vector.shape_cast %5 : vector<16xf32> to vector<16x1xf32>
    %7 = math.sqrt %6 : vector<16x1xf32>
    %cst_7 = arith.constant 9.99999996E-13 : f32
    %8 = vector.broadcast %cst_7 : f32 to vector<16x1xf32>
    %9 = arith.maximumf %7, %8 : vector<16x1xf32>
    %10 = tpu.reciprocal %9 {approx = true} : vector<16x1xf32> -> vector<16x1xf32>
    %cst_8 = arith.constant 0.000000e+00 : f32
    %cst_9 = arith.constant 9.000000e+01 : f32
    %11 = vector.broadcast %cst_8 : f32 to vector<16x1xf32>
    %12 = arith.maximumf %11, %7 : vector<16x1xf32>
    %13 = vector.broadcast %cst_9 : f32 to vector<16x1xf32>
    %14 = arith.minimumf %13, %12 : vector<16x1xf32>
    %cst_10 = arith.constant 0.000000e+00 : f32
    %15 = vector.broadcast %cst_10 : f32 to vector<16x1xf32>
    %16 = arith.subf %14, %15 : vector<16x1xf32>
    %cst_11 = arith.constant 0.00444444455 : f32
    %17 = vector.broadcast %cst_11 : f32 to vector<16x1xf32>
    %18 = arith.mulf %17, %16 : vector<16x1xf32>
    %cst_12 = arith.constant 3.500000e-01 : f32
    %19 = vector.broadcast %cst_12 : f32 to vector<16x1xf32>
    %20 = arith.addf %18, %19 : vector<16x1xf32>
    %21 = math.cos %20 : vector<16x1xf32>
    %22 = math.sin %20 : vector<16x1xf32>
    %23 = arith.mulf %2, %2 : vector<128x64xf32>
    %cst_13 = arith.constant dense<0.000000e+00> : vector<128xf32>
    %24 = vector.multi_reduction <add>, %23, %cst_13 [1] : vector<128x64xf32> to vector<128xf32>
    %25 = vector.shape_cast %24 : vector<128xf32> to vector<128x1xf32>
    %26 = math.sqrt %25 : vector<128x1xf32>
    %cst_14 = arith.constant 9.99999996E-13 : f32
    %27 = vector.broadcast %cst_14 : f32 to vector<128x1xf32>
    %28 = arith.maximumf %26, %27 : vector<128x1xf32>
    %29 = tpu.reciprocal %28 {approx = true} : vector<128x1xf32> -> vector<128x1xf32>
    %30 = vector.broadcast %10 : vector<16x1xf32> to vector<16x64xf32>
    %31 = arith.mulf %1, %30 : vector<16x64xf32>
    %32 = arith.truncf %31 : vector<16x64xf32> to vector<16x64xbf16>
    %33 = vector.broadcast %29 : vector<128x1xf32> to vector<128x64xf32>
    %34 = arith.mulf %2, %33 : vector<128x64xf32>
    %35 = arith.truncf %34 : vector<128x64xf32> to vector<128x64xbf16>
    %cst_15 = arith.constant dense<0.000000e+00> : vector<16x128xf32>
    %36 = tpu.matmul %32, %35, %cst_15 {dimension_numbers = #tpu.dot_dimension_numbers<[1], [1], [0], [0], [0, 0, 1, 0], [], []>} : vector<16x64xbf16>, vector<128x64xbf16>, vector<16x128xf32> -> vector<16x128xf32>
    %37 = tpu.iota {dimensions = array<i32: 1>} : vector<16x128xi32>
    %c128_i32 = arith.constant 128 : i32
    %38 = arith.muli %arg1, %c128_i32 : i32
    %39 = vector.broadcast %38 : i32 to vector<16x128xi32>
    %40 = arith.addi %37, %39 : vector<16x128xi32>
    %41 = vector.broadcast %3 : vector<16x1xi32> to vector<16x128xi32>
    %42 = arith.cmpi eq, %40, %41 : vector<16x128xi32>
    %43 = arith.extui %42 : vector<16x128xi1> to vector<16x128xi32>
    %44 = arith.sitofp %43 : vector<16x128xi32> to vector<16x128xf32>
    %45 = arith.mulf %44, %36 : vector<16x128xf32>
    %cst_16 = arith.constant dense<0.000000e+00> : vector<16xf32>
    %46 = vector.multi_reduction <add>, %45, %cst_16 [1] : vector<16x128xf32> to vector<16xf32>
    %47 = vector.shape_cast %46 : vector<16xf32> to vector<16x1xf32>
    %48 = arith.mulf %47, %47 : vector<16x1xf32>
    %cst_17 = arith.constant 1.000000e+00 : f32
    %49 = vector.broadcast %cst_17 : f32 to vector<16x1xf32>
    %50 = arith.subf %49, %48 : vector<16x1xf32>
    %cst_18 = arith.constant 0.000000e+00 : f32
    %cst_19 = arith.constant 1.000000e+00 : f32
    %51 = vector.broadcast %cst_18 : f32 to vector<16x1xf32>
    %52 = arith.maximumf %51, %50 : vector<16x1xf32>
    %53 = vector.broadcast %cst_19 : f32 to vector<16x1xf32>
    %54 = arith.minimumf %53, %52 : vector<16x1xf32>
    %55 = math.sqrt %54 : vector<16x1xf32>
    %56 = arith.mulf %47, %21 : vector<16x1xf32>
    %57 = arith.mulf %55, %22 : vector<16x1xf32>
    %58 = arith.subf %56, %57 : vector<16x1xf32>
    %cst_20 = arith.constant 0.000000e+00 : f32
    %59 = vector.broadcast %cst_20 : f32 to vector<16x1xf32>
    %60 = arith.cmpf ogt, %47, %59 : vector<16x1xf32>
    %61 = arith.select %60, %58, %47 : vector<16x1xi1>, vector<16x1xf32>
    %62 = vector.broadcast %0 : f32 to vector<16x128xf32>
    %63 = arith.mulf %62, %36 : vector<16x128xf32>
    %64 = math.exp %63 : vector<16x128xf32>
    %cst_21 = arith.constant dense<0.000000e+00> : vector<16xf32>
    %65 = vector.multi_reduction <add>, %64, %cst_21 [1] : vector<16x128xf32> to vector<16xf32>
    %66 = vector.shape_cast %65 : vector<16xf32> to vector<16x1xf32>
    %67 = arith.subf %61, %47 : vector<16x1xf32>
    %68 = vector.broadcast %67 : vector<16x1xf32> to vector<16x128xf32>
    %69 = arith.mulf %44, %68 : vector<16x128xf32>
    %70 = arith.addf %36, %69 : vector<16x128xf32>
    %71 = arith.truncf %70 : vector<16x128xf32> to vector<16x128xbf16>
    %c0_22 = arith.constant 0 : index
    %c0_23 = arith.constant 0 : index
    %72 = vector.load %arg6[%c0_22, %c0_23] : memref<16x128xbf16, #tpu.memory_space<vmem>>, vector<16x128xbf16>
    tpu.vector_store %arg6[%c0_22, %c0_23], %71 {strides = array<i32>} : memref<16x128xbf16, #tpu.memory_space<vmem>>, vector<16x128xbf16>,
    %c0_i32 = arith.constant 0 : i32
    %73 = arith.cmpi eq, %arg1, %c0_i32 : i32
    %74 = arith.extui %73 : i1 to i32
    %c0_i32_24 = arith.constant 0 : i32
    %75 = arith.cmpi ne, %74, %c0_i32_24 : i32
    scf.if %75 {
      %cst_37 = arith.constant 0.000000e+00 : f32
      %85 = vector.broadcast %cst_37 : f32 to vector<16x1xf32>
      %c0_38 = arith.constant 0 : index
      %c0_39 = arith.constant 0 : index
      %86 = vector.load %arg7[%c0_38, %c0_39] : memref<16x1xf32, #tpu.memory_space<vmem>>, vector<16x1xf32>
      tpu.vector_store %arg7[%c0_38, %c0_39], %85 {strides = array<i32>} : memref<16x1xf32, #tpu.memory_space<vmem>>, vector<16x1xf32>,
      %cst_40 = arith.constant 0.000000e+00 : f32
      %87 = vector.broadcast %cst_40 : f32 to vector<16x1xf32>
      %c0_41 = arith.constant 0 : index
      %c0_42 = arith.constant 0 : index
      %88 = vector.load %arg8[%c0_41, %c0_42] : memref<16x1xf32, #tpu.memory_space<vmem>>, vector<16x1xf32>
      tpu.vector_store %arg8[%c0_41, %c0_42], %87 {strides = array<i32>} : memref<16x1xf32, #tpu.memory_space<vmem>>, vector<16x1xf32>,
      %cst_43 = arith.constant 0.000000e+00 : f32
      %89 = vector.broadcast %cst_43 : f32 to vector<16x1xf32>
      %c0_44 = arith.constant 0 : index
      %c0_45 = arith.constant 0 : index
      %90 = vector.load %arg9[%c0_44, %c0_45] : memref<16x1xf32, #tpu.memory_space<vmem>>, vector<16x1xf32>
      tpu.vector_store %arg9[%c0_44, %c0_45], %89 {strides = array<i32>} : memref<16x1xf32, #tpu.memory_space<vmem>>, vector<16x1xf32>,
    } else {
    }
    %c0_25 = arith.constant 0 : index
    %c0_26 = arith.constant 0 : index
    %76 = vector.load %arg7[%c0_25, %c0_26] : memref<16x1xf32, #tpu.memory_space<vmem>>, vector<16x1xf32>
    %77 = arith.addf %76, %47 : vector<16x1xf32>
    %c0_27 = arith.constant 0 : index
    %c0_28 = arith.constant 0 : index
    %78 = vector.load %arg7[%c0_27, %c0_28] : memref<16x1xf32, #tpu.memory_space<vmem>>, vector<16x1xf32>
    tpu.vector_store %arg7[%c0_27, %c0_28], %77 {strides = array<i32>} : memref<16x1xf32, #tpu.memory_space<vmem>>, vector<16x1xf32>,
    %c0_29 = arith.constant 0 : index
    %c0_30 = arith.constant 0 : index
    %79 = vector.load %arg8[%c0_29, %c0_30] : memref<16x1xf32, #tpu.memory_space<vmem>>, vector<16x1xf32>
    %80 = arith.addf %79, %61 : vector<16x1xf32>
    %c0_31 = arith.constant 0 : index
    %c0_32 = arith.constant 0 : index
    %81 = vector.load %arg8[%c0_31, %c0_32] : memref<16x1xf32, #tpu.memory_space<vmem>>, vector<16x1xf32>
    tpu.vector_store %arg8[%c0_31, %c0_32], %80 {strides = array<i32>} : memref<16x1xf32, #tpu.memory_space<vmem>>, vector<16x1xf32>,
    %c0_33 = arith.constant 0 : index
    %c0_34 = arith.constant 0 : index
    %82 = vector.load %arg9[%c0_33, %c0_34] : memref<16x1xf32, #tpu.memory_space<vmem>>, vector<16x1xf32>
    %83 = arith.addf %82, %66 : vector<16x1xf32>
    %c0_35 = arith.constant 0 : index
    %c0_36 = arith.constant 0 : index
    %84 = vector.load %arg9[%c0_35, %c0_36] : memref<16x1xf32, #tpu.memory_space<vmem>>, vector<16x1xf32>
    tpu.vector_store %arg9[%c0_35, %c0_36], %83 {strides = array<i32>} : memref<16x1xf32, #tpu.memory_space<vmem>>, vector<16x1xf32>,
    return
  }
  func.func @transform_0(%arg0: i32, %arg1: i32) -> (i32, i32) {
    %c0_i32 = arith.constant 0 : i32
    %c0_i32_0 = arith.constant 0 : i32
    %c0_i32_1 = arith.constant 0 : i32
    return %c0_i32, %c0_i32_0 : i32, i32
  }
  func.func @transform_1(%arg0: i32, %arg1: i32) -> (i32, i32) {
    %c0_i32 = arith.constant 0 : i32
    %c0_i32_0 = arith.constant 0 : i32
    return %arg0, %c0_i32 : i32, i32
  }
  func.func @transform_2(%arg0: i32, %arg1: i32) -> (i32, i32) {
    %c0_i32 = arith.constant 0 : i32
    %c0_i32_0 = arith.constant 0 : i32
    return %arg1, %c0_i32 : i32, i32
  }
  func.func @transform_3(%arg0: i32, %arg1: i32) -> (i32, i32) {
    %c0_i32 = arith.constant 0 : i32
    %c0_i32_0 = arith.constant 0 : i32
    return %arg0, %c0_i32 : i32, i32
  }
  func.func @transform_4(%arg0: i32, %arg1: i32) -> (i32, i32) {
    %c0_i32 = arith.constant 0 : i32
    return %arg0, %arg1 : i32, i32
  }
  func.func @transform_5(%arg0: i32, %arg1: i32) -> (i32, i32) {
    %c0_i32 = arith.constant 0 : i32
    %c0_i32_0 = arith.constant 0 : i32
    return %arg0, %c0_i32 : i32, i32
  }
  func.func @transform_6(%arg0: i32, %arg1: i32) -> (i32, i32) {
    %c0_i32 = arith.constant 0 : i32
    %c0_i32_0 = arith.constant 0 : i32
    return %arg0, %c0_i32 : i32, i32
  }
  func.func @transform_7(%arg0: i32, %arg1: i32) -> (i32, i32) {
    %c0_i32 = arith.constant 0 : i32
    %c0_i32_0 = arith.constant 0 : i32
    return %arg0, %c0_i32 : i32, i32
  }
}

module attributes {stable_mosaic.version = 11 : i64} {
  func.func @_ce_kernel(%arg0: i32, %arg1: i32, %arg2: memref<1x1xf32, #tpu.memory_space<smem>>, %arg3: memref<16x128xbf16, #tpu.memory_space<vmem>>, %arg4: memref<16x1xf32, #tpu.memory_space<vmem>>, %arg5: memref<16x1xf32, #tpu.memory_space<vmem>>, %arg6: memref<16x1xf32, #tpu.memory_space<vmem>>) attributes {dimension_semantics = [#tpu.dimension_semantics<parallel>, #tpu.dimension_semantics<arbitrary>], iteration_bounds = array<i64: 2, 2>, scalar_prefetch = 0 : i64, scratch_operands = 2 : i64, tpu.core_type = #tpu.core_type<tc>, window_params = [{transform_indices = @transform_0, window_bounds = array<i64: 1, 1>}, {transform_indices = @transform_1, window_bounds = array<i64: 16, 128>}, {transform_indices = @transform_2, window_bounds = array<i64: 16, 1>}]} {
    %c0 = arith.constant 0 : index
    %c0_0 = arith.constant 0 : index
    %0 = memref.load %arg2[%c0, %c0_0] : memref<1x1xf32, #tpu.memory_space<smem>>
    %c0_i32 = arith.constant 0 : i32
    %1 = arith.cmpi eq, %arg1, %c0_i32 : i32
    %2 = arith.extui %1 : i1 to i32
    %c0_i32_1 = arith.constant 0 : i32
    %3 = arith.cmpi ne, %2, %c0_i32_1 : i32
    scf.if %3 {
      %cst_16 = arith.constant 0xFF800000 : f32
      %28 = vector.broadcast %cst_16 : f32 to vector<16x1xf32>
      %c0_17 = arith.constant 0 : index
      %c0_18 = arith.constant 0 : index
      %29 = vector.load %arg5[%c0_17, %c0_18] : memref<16x1xf32, #tpu.memory_space<vmem>>, vector<16x1xf32>
      tpu.vector_store %arg5[%c0_17, %c0_18], %28 {strides = array<i32>} : memref<16x1xf32, #tpu.memory_space<vmem>>, vector<16x1xf32>,
      %cst_19 = arith.constant 0.000000e+00 : f32
      %30 = vector.broadcast %cst_19 : f32 to vector<16x1xf32>
      %c0_20 = arith.constant 0 : index
      %c0_21 = arith.constant 0 : index
      %31 = vector.load %arg6[%c0_20, %c0_21] : memref<16x1xf32, #tpu.memory_space<vmem>>, vector<16x1xf32>
      tpu.vector_store %arg6[%c0_20, %c0_21], %30 {strides = array<i32>} : memref<16x1xf32, #tpu.memory_space<vmem>>, vector<16x1xf32>,
    } else {
    }
    %c0_2 = arith.constant 0 : index
    %c0_3 = arith.constant 0 : index
    %4 = vector.load %arg3[%c0_2, %c0_3] : memref<16x128xbf16, #tpu.memory_space<vmem>>, vector<16x128xbf16>
    %5 = arith.extf %4 : vector<16x128xbf16> to vector<16x128xf32>
    %6 = vector.broadcast %0 : f32 to vector<16x128xf32>
    %7 = arith.mulf %5, %6 : vector<16x128xf32>
    %c0_4 = arith.constant 0 : index
    %c0_5 = arith.constant 0 : index
    %8 = vector.load %arg5[%c0_4, %c0_5] : memref<16x1xf32, #tpu.memory_space<vmem>>, vector<16x1xf32>
    %cst = arith.constant dense<0xFF800000> : vector<16xf32>
    %9 = vector.multi_reduction <maximumf>, %7, %cst [1] : vector<16x128xf32> to vector<16xf32>
    %10 = vector.shape_cast %9 : vector<16xf32> to vector<16x1xf32>
    %11 = arith.maximumf %8, %10 : vector<16x1xf32>
    %c0_6 = arith.constant 0 : index
    %c0_7 = arith.constant 0 : index
    %12 = vector.load %arg5[%c0_6, %c0_7] : memref<16x1xf32, #tpu.memory_space<vmem>>, vector<16x1xf32>
    %13 = arith.subf %12, %11 : vector<16x1xf32>
    %14 = math.exp %13 : vector<16x1xf32>
    %c0_8 = arith.constant 0 : index
    %c0_9 = arith.constant 0 : index
    %15 = vector.load %arg6[%c0_8, %c0_9] : memref<16x1xf32, #tpu.memory_space<vmem>>, vector<16x1xf32>
    %16 = arith.mulf %14, %15 : vector<16x1xf32>
    %17 = vector.broadcast %11 : vector<16x1xf32> to vector<16x128xf32>
    %18 = arith.subf %7, %17 : vector<16x128xf32>
    %19 = math.exp %18 : vector<16x128xf32>
    %cst_10 = arith.constant dense<0.000000e+00> : vector<16xf32>
    %20 = vector.multi_reduction <add>, %19, %cst_10 [1] : vector<16x128xf32> to vector<16xf32>
    %21 = vector.shape_cast %20 : vector<16xf32> to vector<16x1xf32>
    %22 = arith.addf %16, %21 : vector<16x1xf32>
    %c0_11 = arith.constant 0 : index
    %c0_12 = arith.constant 0 : index
    %23 = vector.load %arg6[%c0_11, %c0_12] : memref<16x1xf32, #tpu.memory_space<vmem>>, vector<16x1xf32>
    tpu.vector_store %arg6[%c0_11, %c0_12], %22 {strides = array<i32>} : memref<16x1xf32, #tpu.memory_space<vmem>>, vector<16x1xf32>,
    %c0_13 = arith.constant 0 : index
    %c0_14 = arith.constant 0 : index
    %24 = vector.load %arg5[%c0_13, %c0_14] : memref<16x1xf32, #tpu.memory_space<vmem>>, vector<16x1xf32>
    tpu.vector_store %arg5[%c0_13, %c0_14], %11 {strides = array<i32>} : memref<16x1xf32, #tpu.memory_space<vmem>>, vector<16x1xf32>,
    %c1_i32 = arith.constant 1 : i32
    %25 = arith.cmpi eq, %arg1, %c1_i32 : i32
    %26 = arith.extui %25 : i1 to i32
    %c0_i32_15 = arith.constant 0 : i32
    %27 = arith.cmpi ne, %26, %c0_i32_15 : i32
    scf.if %27 {
      %c0_16 = arith.constant 0 : index
      %c0_17 = arith.constant 0 : index
      %28 = vector.load %arg5[%c0_16, %c0_17] : memref<16x1xf32, #tpu.memory_space<vmem>>, vector<16x1xf32>
      %c0_18 = arith.constant 0 : index
      %c0_19 = arith.constant 0 : index
      %29 = vector.load %arg6[%c0_18, %c0_19] : memref<16x1xf32, #tpu.memory_space<vmem>>, vector<16x1xf32>
      %30 = math.log %29 : vector<16x1xf32>
      %31 = arith.addf %28, %30 : vector<16x1xf32>
      %c0_20 = arith.constant 0 : index
      %c0_21 = arith.constant 0 : index
      %32 = vector.load %arg4[%c0_20, %c0_21] : memref<16x1xf32, #tpu.memory_space<vmem>>, vector<16x1xf32>
      tpu.vector_store %arg4[%c0_20, %c0_21], %31 {strides = array<i32>} : memref<16x1xf32, #tpu.memory_space<vmem>>, vector<16x1xf32>,
    } else {
    }
    return
  }
  func.func @transform_0(%arg0: i32, %arg1: i32) -> (i32, i32) {
    %c0_i32 = arith.constant 0 : i32
    %c0_i32_0 = arith.constant 0 : i32
    %c0_i32_1 = arith.constant 0 : i32
    return %c0_i32, %c0_i32_0 : i32, i32
  }
  func.func @transform_1(%arg0: i32, %arg1: i32) -> (i32, i32) {
    %c0_i32 = arith.constant 0 : i32
    return %arg0, %arg1 : i32, i32
  }
  func.func @transform_2(%arg0: i32, %arg1: i32) -> (i32, i32) {
    %c0_i32 = arith.constant 0 : i32
    %c0_i32_0 = arith.constant 0 : i32
    return %arg0, %c0_i32 : i32, i32
  }
}

</mosaic_0001>

<bundles_post_ra>
// kernel: ada_magface_loss.3
= control target key start
LH: loop header
LB: loop body
LE: loop exit
PB: predicated region body
PF: predicated region fallthrough
CT: control target
= control target key end

     0   :  { %s634_s0 = inlined_call_operand.<no memory space> [shape: f32[1,1], index: 0, kind: input, shape index: {}]   ;;  %s635_s1 = inlined_call_operand.vmem [shape: bf16[32,256], index: 1, kind: input, shape index: {}]   ;;  %s636_s2 = inlined_call_operand.vmem [shape: f32[32,1], index: 2, kind: output, shape index: {}]  }
   0x1   :  { %7 = sst [smem:[#allocation4]] %s634_s0 }
   0x2   :  { %s534_s11 = smov 0   ;;  %s536_s12 = smov 0  }
   0x3   :  { %s538_s13 = smov 0   ;;  %s540_s14 = smov 0  }
   0x4   :  { %s542_s15 = smov 0   ;;  %s544_s16 = smov 0  }
   0x5   :  { %s546_s17 = smov 0  }
   0x6 LB: > { %s22_s0 = sadd.s32 1, %s503_s15  ;;  %s25_s18 = sadd.s32 1, %s507_s16  ;;  %s511_s17 = sphi %s546_s17, %s13_s17   ;;  %s507_s16 = sphi %s544_s16, %s642_s16   ;;  %s503_s15 = sphi %s542_s15, %s641_s15   ;;  %s499_s14 = sphi %s540_s14, %s640_s14   ;;  %s495_s13 = sphi %s538_s13, %s639_s13   ;;  %s491_s12 = sphi %s536_s12, %s638_s12   ;;  %s487_s11 = sphi %s534_s11, %s637_s11  }
   0x7   : > { %p23_p0 = scmp.ge.s32.totalorder %s22_s0, 2  ;;  %p62_p1 = scmp.ne.s32.totalorder %s491_s12, %s487_s11 }
   0x8   : > { %p63_p2 = scmp.eq.s32.totalorder %s511_s17, 0  ;;  %s55_s22 = sadd.s32 1, %s491_s12 }
   0x9   : > { %s644_s0 = smov (%p23_p0, %s22_s0), 0  ;;  %s646_s18 = smov (!%p23_p0, %s25_s18), %s507_s16 }
   0xa   : > { %p64_p3 = por %p63_p2, %p62_p1  ;;  %p27_p4 = scmp.ge.s32.totalorder %s646_s18, 2 }
   0xb   : > { %s51_s19 = ssub.s32 %s503_s15, %s644_s0  ;;  %p366_p6 = scmp.ge.s32.totalorder %s511_s17, 4 }
   0xc   : > { %s648_s18 = smov (%p27_p4, %s646_s18), 0 }
   0xd   : > { %s50_s20 = ssub.s32 %s507_s16, %s648_s18  ;;  %117 = sbr.rel (%p366_p6) target bundleno = 27 (0x1b), region = 20 }
   0xe   : > { %s52_s21 = sor.u32 %s51_s19, %s50_s20 }
   0xf   : > { %p53_p5 = scmp.eq.s32.totalorder %s52_s21, 0 }
  0x11   : > { %s585_s23 = scalar_select %p53_p5, %s491_s12, %s55_s22  }
  0x14   : > { %120 = sbr.rel (!%p64_p3) target bundleno = 27 (0x1b), region = 24  ;;  %s122_s24 = sand.u32 (%p64_p3), 1, %s491_s12  }
  0x15   : > { %s379_s25 = sshll.u32 (%p64_p3), %s507_s16, 2  ;;  %s367_s26 = sshll.u32 (%p64_p3), %s122_s24, 3 }
  0x16   : > { %s127_s27 = sadd.s32 (%p64_p3), %s503_s15, %s379_s25  ;;  %s124_s4 = scalar_lea.vmem (%p64_p3), [#allocation5], %s367_s26 }
  0x17   : > { %s370_s28 = sshll.u32 (%p64_p3), %s127_s27, 2 }
  0x18   : > { %s129_s3 = scalar_lea.vmem (%p64_p3), %s635_s1, %s370_s28 }
  0x19   : > { %v145_v0 = vld [vmem:[%s129_s3] sm:$0xf] (%p64_p3)  ;;  %v147_v1 = vld [vmem:[%s129_s3 + $0x8] sm:$0xf] (%p64_p3) }
  0x1a   : > { %146 = vst [vmem:[%s124_s4] sm:$0xf] (%p64_p3), %v145_v0  ;;  %148 = vst [vmem:[%s124_s4 + $0x4] sm:$0xf] (%p64_p3), %v147_v1 }
  0x1b PF: > { %p371_p7 = scmp.ge.s32.totalorder %s511_s17, 1  ;;  %p174_p8 = scmp.lt.s32.totalorder %s511_s17, 5 }
  0x1d   : > { %p175_p9 = pnand %p371_p7, %p174_p8 }
  0x1e   : > { %s181_s5 = sand.u32 (!%p175_p9), 1, %s487_s11   ;;  %s373_s6 = sshll.u32 (!%p175_p9), %s499_s14, 1 }
  0x1f   : > { %178 = sbr.rel (%p175_p9) target bundleno = 509 (0x1fd), region = 65  ;;  %s372_s7 = sshll.u32 (!%p175_p9), %s181_s5, 3 }
  0x20   : > { %p204_p10 = scmp.lt.s32.totalorder (!%p175_p9), %s373_s6, 3  ;;  %s209_s8 = sld [smem:[#allocation4]] (!%p175_p9) }
  0x21   : > { %s183_s21 = scalar_lea.vmem (!%p175_p9), [#allocation5], %s372_s7  ;;  %p375_p11 = scmp.ne.s32.totalorder (!%p175_p9), %s495_s13, 0 }
  0x26   : > { %s650_s6 = smov (!%p204_p10, %s373_s6), 3  ;;  %213 = sbr.rel (%p375_p11) target bundleno = 45 (0x2d), region = 73 }
  0x27   : > { %s374_s9 = sshll.u32 %s650_s6, 3  ;;  %vm214_vm0 = vcmask (!%p375_p11), 7168   ;;  %v513_v2 = vmov (!%p375_p11), -inf   ;;  %v514_v3 = vmov (!%p375_p11), 0.0  }
  0x28   : > { %s601_s20 = scalar_lea.vmem %s636_s2, %s374_s9  ;;  %215 = vst.msk [vmem:[#allocation2] sm:$0xff] (!%p375_p11), %vm214_vm0, %v513_v2  ;;  %216 = vst.msk [vmem:[#allocation2 + $0x8] sm:$0xff] (!%p375_p11), %vm214_vm0, %v513_v2 }
  0x29   : > { %217 = vst.msk [vmem:[#allocation3] sm:$0xff] (!%p375_p11), %vm214_vm0, %v514_v3  ;;  %218 = vst.msk [vmem:[#allocation3 + $0x8] sm:$0xff] (!%p375_p11), %vm214_vm0, %v514_v3 }
  0x2d PF: > { %v381_v4 = vld [vmem:[%s183_s21] sm:$0xff]   ;;  %v223_v5 = vstv %s209_s8  ;;  %v515_v10 = vmov 0   ;;  %vm266_vm1 = vcmask 7168   ;;  %p376_p12 = scmp.ne.s32.totalorder %s495_s13, 1 }
  0x2e   : > { %v382_v6 = vunpack.c.l.bf16 %v381_v4  ;;  %v383_v7 = vunpack.c.h.bf16 %v381_v4  ;;  %443 = vset.pattern.permute.xlu1 %v515_v10  ;;  %444 = vset.pattern.permute.xlu0 %v515_v10 }
  0x2f   : > { %v226_v11 = vld [vmem:[#allocation2] sm:$0xff]  ;;  %v227_v14 = vld [vmem:[#allocation2 + $0x8] sm:$0xff] }
  0x30   : > { %v224_v8 = vmul.f32 %v382_v6, %v223_v5  ;;  %v225_v9 = vmul.f32 %v383_v7, %v223_v5  ;;  %v240_v30 = vld [vmem:[#allocation3] sm:$0xff]  ;;  %v241_v34 = vld [vmem:[#allocation3 + $0x8] sm:$0xff] }
  0x32   : > { %228 = vmax.xlane.f32.xlu0 %v224_v8 }
  0x36   : > { %230 = vmax.xlane.f32.xlu0 %v225_v9 }
  0xbf   : > { %v229_v12 = vpop.xlane.xlu0 %228 }
  0xc0   : > { %v232_v13 = vmax.f32 %v226_v11, %v229_v12 }
  0xc2   : > { %v234_v15 = vsub.f32 %v226_v11, %v232_v13  ;;  %269 = vst.msk [vmem:[#allocation2] sm:$0xff] %vm266_vm1, %v232_v13  ;;  %246 = vperm.xlu1 %443, %v232_v13  }
  0xc3   : > { %v231_v16 = vpop.xlane.xlu0 %230 }
  0xc4   : > { %v233_v17 = vmax.f32 %v227_v14, %v231_v16  ;;  %v236_v27 = vmul.f32 1.442695, %v234_v15 }
  0xc6   : > { %v235_v18 = vsub.f32 %v227_v14, %v233_v17  ;;  %270 = vst.msk [vmem:[#allocation2 + $0x8] sm:$0xff] %vm266_vm1, %v233_v17  ;;  %251 = vperm.xlu1 %443, %v233_v17  }
  0xc8   : > { %v238_v28 = vmul.f32 1.442695, %v235_v18 }
  0xc9   : > { %v275_v42 = vld [vmem:[#allocation2] sm:$0xff] (!%p376_p12) }
  0xcd   : > { %v276_v45 = vld [vmem:[#allocation2 + $0x8] sm:$0xff] (!%p376_p12) }
 0x141   : > { %v247_v19 = vpop.permute.xlu1 %246 }
 0x142   : > { %v254_v20 = vsub.f32 %v224_v8, %v247_v19 }
 0x144   : > { %v256_v21 = vmul.f32 1.442695, %v254_v20 }
 0x145   : > { %v252_v22 = vpop.permute.xlu1 %251 }
 0x146   : > { %445 = vpow2.f32 %v256_v21  ;;  %v255_v23 = vsub.f32 %v225_v9, %v252_v22 }
 0x148   : > { %v258_v24 = vmul.f32 1.442695, %v255_v23 }
 0x14a   : > { %447 = vpow2.f32 %v258_v24 }
 0x14b   : > { %449 = vpow2.f32 %v236_v27 }
 0x14c   : > { %451 = vpow2.f32 %v238_v28 }
 0x150   : > { %v446_v25 = vpop.eup %445 }
 0x151   : > { %260 = vadd.xlane.f32.xlu0 %v446_v25 }
 0x154   : > { %v448_v26 = vpop.eup %447 }
 0x155   : > { %262 = vadd.xlane.f32.xlu1 %v448_v26  ;;  %v450_v29 = vpop.eup %449 }
 0x156   : > { %v242_v31 = vmul.f32 %v450_v29, %v240_v30  ;;  %v452_v32 = vpop.eup %451 }
 0x157   : > { %v243_v36 = vmul.f32 %v452_v32, %v241_v34 }
 0x1de   : > { %v261_v33 = vpop.xlane.xlu0 %260 }
 0x1df   : > { %v264_v35 = vadd.f32 %v261_v33, %v242_v31  ;;  %274 = sbr.rel (%p376_p12) target bundleno = 509 (0x1fd), region = 77 }
 0x1e1   : > { %267 = vst.msk [vmem:[#allocation3] sm:$0xff] %vm266_vm1, %v264_v35 }
 0x1e2   : > { %v263_v37 = vpop.xlane.xlu1 %262 }
 0x1e3   : > { %v265_v38 = vadd.f32 %v263_v37, %v243_v36 }
 0x1e5   : > { %268 = vst.msk [vmem:[#allocation3 + $0x8] sm:$0xff] %vm266_vm1, %v265_v38 }
 0x1e8   : > { %v277_v39 = vld [vmem:[#allocation3] sm:$0xff] }
 0x1e9   : > { %453 = vlog2.f32 %v277_v39 }
 0x1ec   : > { %v278_v40 = vld [vmem:[#allocation3 + $0x8] sm:$0xff] }
 0x1ed   : > { %455 = vlog2.f32 %v278_v40 }
 0x1f3   : > { %v454_v41 = vpop.eup %453 }
 0x1f4   : > { %v280_v44 = vmul.f32 0.6931472, %v454_v41 }
 0x1f6   : > { %v283_v47 = vadd.f32 %v280_v44, %v275_v42 }
 0x1f7   : > { %v456_v43 = vpop.eup %455 }
 0x1f8   : > { %v282_v46 = vmul.f32 0.6931472, %v456_v43  ;;  %285 = vst.msk [vmem:[%s601_s20] sm:$0xff] %vm266_vm1, %v283_v47 }
 0x1fa   : > { %v284_v48 = vadd.f32 %v282_v46, %v276_v45 }
 0x1fc   : > { %286 = vst.msk [vmem:[%s601_s20 + $0x8] sm:$0xff] %vm266_vm1, %v284_v48 }
 0x1fd PF: > { %s13_s17 = sadd.s32 1, %s511_s17   ;;  %s637_s11 = smov %s491_s12 }
 0x1fe   : > { %p10_p13 = scmp.ge.s32.totalorder %s13_s17, 6   ;;  %s638_s12 = smov %s585_s23 }
 0x1ff   : > { %s639_s13 = smov %s503_s15  ;;  %s640_s14 = smov %s507_s16 }
 0x200   : > { %s641_s15 = smov %s644_s0  ;;  %s642_s16 = smov %s648_s18 }
 0x201   :  { %12 = sbr.rel (!%p10_p13) target bundleno = 6 (0x6), region = 112 }

// kernel: ada_magface_loss.2
= control target key start
LH: loop header
LB: loop body
LE: loop exit
PB: predicated region body
PF: predicated region fallthrough
CT: control target
= control target key end

     0   :  { %s2428_s0 = inlined_call_operand.<no memory space> [shape: f32[1,1], index: 0, kind: input, shape index: {}]   ;;  %s2429_s1 = inlined_call_operand.vmem [shape: f32[32,64], index: 1, kind: input, shape index: {}]   ;;  %s2430_s2 = inlined_call_operand.vmem [shape: f32[256,64], index: 2, kind: input, shape index: {}]   ;;  %s2431_s3 = inlined_call_operand.vmem [shape: s32[32,1], index: 3, kind: input, shape index: {}]   ;;  %s2432_s4 = inlined_call_operand.vmem [shape: bf16[32,256], index: 4, kind: output, shape index: {0}]   ;;  %s2433_s5 = inlined_call_operand.vmem [shape: f32[32,1], index: 5, kind: output, shape index: {1}]   ;;  %s2434_s6 = inlined_call_operand.vmem [shape: f32[32,1], index: 6, kind: output, shape index: {2}]   ;;  %s2435_s7 = inlined_call_operand.vmem [shape: f32[32,1], index: 7, kind: output, shape index: {3}]  }
   0x1   :  { %13 = sst [smem:[#allocation2]] %s2428_s0 }
   0x2   :  { %s1863_s26 = smov 0   ;;  %s1865_s27 = smov 0  }
   0x3   :  { %s1867_s28 = smov 0   ;;  %s1869_s29 = smov 0  }
   0x4   :  { %s1871_s30 = smov 0   ;;  %s1873_s8 = smov 0  }
   0x5   :  { %s1875_s9 = smov 0  }
   0x6 LB: > { %s28_s0 = sadd.s32 1, %s1800_s30  ;;  %s31_s10 = sadd.s32 1, %s1804_s8  ;;  %s1808_s9 = sphi %s1875_s9, %s19_s9   ;;  %s1804_s8 = sphi %s1873_s8, %s2442_s8   ;;  %s1800_s30 = sphi %s1871_s30, %s2441_s30   ;;  %s1796_s29 = sphi %s1869_s29, %s2440_s29   ;;  %s1792_s28 = sphi %s1867_s28, %s2439_s28   ;;  %s1788_s27 = sphi %s1865_s27, %s2438_s27   ;;  %s1784_s26 = sphi %s1863_s26, %s2437_s26  }
   0x7   : > { %p29_p0 = scmp.ge.s32.totalorder %s28_s0, 2  ;;  %s1506_s11 = sadd.s32 4294967295, %s1808_s9  }
   0x8   : > { %p149_p1 = scmp.ne.s32.totalorder %s1788_s27, %s1784_s26  ;;  %p150_p2 = scmp.eq.s32.totalorder %s1506_s11, 3 }
   0x9   : > { %s2444_s0 = smov (%p29_p0, %s28_s0), 0  ;;  %s2446_s10 = smov (!%p29_p0, %s31_s10), %s1804_s8 }
   0xa   : > { %s135_s12 = ssub.s32 %s1800_s30, %s2444_s0  ;;  %p33_p3 = scmp.ge.s32.totalorder %s2446_s10, 2 }
   0xb   : > { %p1510_p4 = scmp.ge.s32.totalorder %s1808_s9, 1  ;;  %p1909_p5 = por %p150_p2, %p149_p1 }
   0xc   : > { %p282_p6 = scmp.lt.s32.totalorder %s1808_s9, 5  ;;  %s2448_s10 = smov (%p33_p3, %s2446_s10), 0 }
   0xd   : > { %s134_s14 = ssub.s32 %s1804_s8, %s2448_s10  ;;  %s139_s16 = sadd.s32 1, %s1788_s27 }
   0xe   : > { %p283_p7 = pnand %p1510_p4, %p282_p6  ;;  %s136_s15 = sor.u32 %s135_s12, %s134_s14 }
   0xf   : > { %p137_p8 = scmp.eq.s32.totalorder %s136_s15, 0  ;;  %s1514_s18 = sshll.u32 (!%p283_p7), %s1792_s28, 4  ;;  %vm399_vm0 = vcmask (!%p283_p7), 523264   ;;  %v1810_v54 = vmov (!%p283_p7), 0.0   ;;  %vm1811_vm1 = vmmov (!%p283_p7), 0   ;;  %v1812_v55 = vmov (!%p283_p7), 0  }
  0x10   : > { %286 = sbr.rel (%p283_p7) target bundleno = 676 (0x2a4), region = 36  ;;  %s1512_s19 = sshll.u32 (!%p283_p7), %s1796_s29, 1  ;;  %1570 = vmatprep.subr.bf16.mxu0 (!%p283_p7), %v1810_v54  ;;  %1586 = vmatprep.mubr.msk.bf16.mxu0 (!%p283_p7), %vm1811_vm1, %v1810_v54 }
  0x11   : > { %s1920_s17 = scalar_select %p137_p8, %s1788_s27, %s139_s16  }
  0x12   : > { %p345_p9 = scmp.lt.s32.totalorder (!%p283_p7), %s1514_s18, 31  ;;  %p339_p10 = scmp.lt.s32.totalorder (!%p283_p7), %s1512_s19, 3  ;;  %1664 = vset.pattern.permute.xlu0 (!%p283_p7), %v1812_v55  ;;  %1665 = vset.pattern.permute.xlu1 (!%p283_p7), %v1812_v55 }
  0x13   : > { %s376_s15 = sld [smem:[#allocation2]] (!%p283_p7)  ;;  %p1546_p11 = scmp.ne.s32.totalorder (!%p283_p7), %s1792_s28, 0 }
  0x17   : > { %s2450_s18 = smov (!%p345_p9, %s1514_s18), 31  ;;  %s2452_s19 = smov (!%p339_p10, %s1512_s19), 3 }
  0x18   : > { %s1515_s20 = sshll.u32 %s2450_s18, 3  ;;  %s1929_s24 = sshll.u32 %s2452_s19, 3 }
  0x19   : > { %s1927_s23 = scalar_lea.vmem %s2430_s2, %s1515_s20  ;;  %s1944_s12 = scalar_lea.vmem %s2433_s5, %s1929_s24 }
  0x1a   : > { %v1932_v0 = vld [vmem:[%s1927_s23 + $0x10] sm:$0xff]  ;;  %v1935_v1 = vld [vmem:[%s1927_s23] sm:$0xff]  ;;  %v1938_v2 = vld [vmem:[%s1927_s23 + $0x18] sm:$0xff]  ;;  %s1959_s16 = scalar_lea.vmem %s2434_s6, %s1929_s24  ;;  %s1965_s20 = scalar_lea.vmem %s2435_s7, %s1929_s24 }
  0x1b   : > { %v848_v3 = vmul.f32 %v1932_v0, %v1932_v0  ;;  %v846_v4 = vmul.f32 %v1935_v1, %v1935_v1  ;;  %v849_v5 = vmul.f32 %v1938_v2, %v1938_v2  ;;  %v1953_v6 = vld [vmem:[%s1927_s23 + $0x8] sm:$0xff]  ;;  %v1973_v9 = vld [vmem:[%s1927_s23 + $0x20] sm:$0xff]  ;;  %v1984_v16 = vld [vmem:[%s1927_s23 + $0x38] sm:$0xff]  ;;  %s342_s25 = scalar_lea.vmem %s2429_s1, %s1929_s24  ;;  %s354_s14 = scalar_lea.vmem %s2431_s3, %s1929_s24 }
  0x1c   : > { %v847_v7 = vmul.f32 %v1953_v6, %v1953_v6  ;;  %v1970_v8 = vld [vmem:[%s1927_s23 + $0x28] sm:$0xff]  ;;  %v850_v15 = vmul.f32 %v1973_v9, %v1973_v9  ;;  %v1987_v17 = vld [vmem:[%s1927_s23 + $0x30] sm:$0xff]  ;;  %v853_v20 = vmul.f32 %v1984_v16, %v1984_v16  ;;  %v1999_v23 = vld [vmem:[%s1927_s23 + $0x40] sm:$0xff]  ;;  %s1541_s24 = sshll.u32 %s1792_s28, 7  ;;  %s314_s18 = sand.u32 1, %s1784_s26  }
  0x1d   : > { %v868_v10 = vsel %vm399_vm0, %v848_v3, 0.0  ;;  %v862_v11 = vsel %vm399_vm0, %v846_v4, 0.0  ;;  %v871_v12 = vsel %vm399_vm0, %v849_v5, 0.0  ;;  %v851_v14 = vmul.f32 %v1970_v8, %v1970_v8  ;;  %v1996_v22 = vld [vmem:[%s1927_s23 + $0x48] sm:$0xff]  ;;  %v2008_v28 = vld [vmem:[%s1927_s23 + $0x58] sm:$0xff]  ;;  %v2011_v29 = vld [vmem:[%s1927_s23 + $0x50] sm:$0xff] }
  0x1e   : > { %869 = vadd.xlane.f32.xlu1 %v868_v10  ;;  %863 = vadd.xlane.f32.xlu0 %v862_v11  ;;  %v865_v13 = vsel %vm399_vm0, %v847_v7, 0.0  ;;  %v874_v19 = vsel %vm399_vm0, %v850_v15, 0.0  ;;  %v852_v21 = vmul.f32 %v1987_v17, %v1987_v17  ;;  %v883_v24 = vsel %vm399_vm0, %v853_v20, 0.0  ;;  %v2020_v34 = vld [vmem:[%s1927_s23 + $0x68] sm:$0xff]  ;;  %v2023_v35 = vld [vmem:[%s1927_s23 + $0x60] sm:$0xff]  ;;  %v2032_v40 = vld [vmem:[%s1927_s23 + $0x78] sm:$0xff] }
  0x1f   : > { %v877_v18 = vsel %vm399_vm0, %v851_v14, 0.0  ;;  %v855_v26 = vmul.f32 %v1996_v22, %v1996_v22  ;;  %v854_v27 = vmul.f32 %v1999_v23, %v1999_v23  ;;  %v857_v32 = vmul.f32 %v2008_v28, %v2008_v28  ;;  %v2035_v41 = vld [vmem:[%s1927_s23 + $0x70] sm:$0xff]  ;;  %v2047_v46 = vld [vmem:[%s342_s25 + $0x8] sm:$0xff]  ;;  %v2049_v47 = vld [vmem:[%s342_s25] sm:$0xff]  ;;  %s1511_s19 = sshll.u32 %s314_s18, 3 }
  0x20   : > { %v880_v25 = vsel %vm399_vm0, %v852_v21, 0.0  ;;  %v856_v33 = vmul.f32 %v2011_v29, %v2011_v29  ;;  %v859_v38 = vmul.f32 %v2020_v34, %v2020_v34  ;;  %v858_v39 = vmul.f32 %v2023_v35, %v2023_v35  ;;  %v395_v56 = vld [vmem:[%s354_s14] sm:$0xff]  ;;  %v396_v57 = vld [vmem:[%s354_s14 + $0x8] sm:$0xff]  ;;  %s2366_s21 = scalar_lea.vmem [#allocation3], %s1511_s19 }
  0x21   : > { %v889_v30 = vsel %vm399_vm0, %v855_v26, 0.0  ;;  %v886_v31 = vsel %vm399_vm0, %v854_v27, 0.0  ;;  %v895_v36 = vsel %vm399_vm0, %v857_v32, 0.0  ;;  %v861_v44 = vmul.f32 %v2032_v40, %v2032_v40 }
  0x22   : > { %872 = vadd.xlane.f32.xlu1 %v871_v12  ;;  %866 = vadd.xlane.f32.xlu0 %v865_v13  ;;  %v892_v37 = vsel %vm399_vm0, %v856_v33, 0.0  ;;  %v901_v42 = vsel %vm399_vm0, %v859_v38, 0.0  ;;  %v898_v43 = vsel %vm399_vm0, %v858_v39, 0.0  ;;  %v860_v45 = vmul.f32 %v2035_v41, %v2035_v41 }
  0x23   : > { %v907_v48 = vsel %vm399_vm0, %v861_v44, 0.0  ;;  %v398_v50 = vmul.f32 %v2047_v46, %v2047_v46  ;;  %v397_v51 = vmul.f32 %v2049_v47, %v2049_v47 }
  0x24   : > { %v904_v49 = vsel %vm399_vm0, %v860_v45, 0.0 }
  0x25   : > { %v403_v52 = vsel %vm399_vm0, %v398_v50, 0.0  ;;  %v400_v53 = vsel %vm399_vm0, %v397_v51, 0.0 }
  0x26   : > { %878 = vadd.xlane.f32.xlu1 %v877_v18  ;;  %875 = vadd.xlane.f32.xlu0 %v874_v19 }
  0x2a   : > { %884 = vadd.xlane.f32.xlu1 %v883_v24  ;;  %881 = vadd.xlane.f32.xlu0 %v880_v25 }
  0x2e   : > { %890 = vadd.xlane.f32.xlu1 %v889_v30  ;;  %887 = vadd.xlane.f32.xlu0 %v886_v31 }
  0x32   : > { %896 = vadd.xlane.f32.xlu1 %v895_v36  ;;  %893 = vadd.xlane.f32.xlu0 %v892_v37 }
  0x36   : > { %902 = vadd.xlane.f32.xlu1 %v901_v42  ;;  %899 = vadd.xlane.f32.xlu0 %v898_v43 }
  0x3a   : > { %908 = vadd.xlane.f32.xlu1 %v907_v48  ;;  %905 = vadd.xlane.f32.xlu0 %v904_v49 }
  0x3e   : > { %404 = vadd.xlane.f32.xlu1 %v403_v52  ;;  %401 = vadd.xlane.f32.xlu0 %v400_v53 }
  0x4f   : > { %1158 = vperm.xlu1 %1665, %v396_v57  }
  0x54   : > { %1155 = vperm.xlu0 %1664, %v395_v56  }
  0xab   : > { %v870_v58 = vpop.xlane.xlu1 %869  ;;  %v864_v59 = vpop.xlane.xlu0 %863 }
  0xac   : > { %1666 = vrsqrt.f32 %v864_v59  ;;  %vm912_vm2 = vcmp.eq.f32.partialorder %v864_v59, inf  ;;  %vm914_vm3 = vcmp.eq.f32.partialorder %v864_v59, 0.0  ;;  %v915_v14 = vand.u32 2147483648, %v864_v59 }
  0xad   : > { %1668 = vrsqrt.f32 %v870_v58  ;;  %vm926_vm8 = vcmp.eq.f32.partialorder %v870_v58, inf  ;;  %v929_v43 = vand.u32 2147483648, %v870_v58  ;;  %vm928_vm9 = vcmp.eq.f32.partialorder %v870_v58, 0.0 }
  0xaf   : > { %v873_v60 = vpop.xlane.xlu1 %872  ;;  %v867_v61 = vpop.xlane.xlu0 %866 }
  0xb0   : > { %1670 = vrsqrt.f32 %v873_v60  ;;  %vm933_vm4 = vcmp.eq.f32.partialorder %v873_v60, inf  ;;  %vm919_vm5 = vcmp.eq.f32.partialorder %v867_v61, inf  ;;  %v922_v25 = vand.u32 2147483648, %v867_v61 }
  0xb1   : > { %1672 = vrsqrt.f32 %v867_v61  ;;  %v936_v26 = vand.u32 2147483648, %v873_v60  ;;  %vm921_vm6 = vcmp.eq.f32.partialorder %v867_v61, 0.0  ;;  %vm935_vm7 = vcmp.eq.f32.partialorder %v873_v60, 0.0 }
  0xb3   : > { %v2065_v62 = vpop.xlane.xlu1 %878  ;;  %v2067_v63 = vpop.xlane.xlu0 %875 }
  0xb4   : > { %1674 = vrsqrt.f32 %v2065_v62  ;;  %vm947_vm10 = vcmp.eq.f32.partialorder %v2065_v62, inf  ;;  %vm940_vm11 = vcmp.eq.f32.partialorder %v2067_v63, inf  ;;  %vm949_vm12 = vcmp.eq.f32.partialorder %v2065_v62, 0.0 }
  0xb5   : > { %1676 = vrsqrt.f32 %v2067_v63  ;;  %v950_v52 = vand.u32 2147483648, %v2065_v62  ;;  %vm942_vm13 = vcmp.eq.f32.partialorder %v2067_v63, 0.0  ;;  %v943_v56 = vand.u32 2147483648, %v2067_v63 }
  0xb6   : > { %v1667_v3 = vpop.eup %1666 }
  0xb7   : > { %v2071_v4 = vpop.xlane.xlu0 %881  ;;  %v911_v5 = vmul.f32 %v1667_v3, %v864_v59  ;;  %v2073_v7 = vpop.xlane.xlu1 %884 }
  0xb8   : > { %v1669_v10 = vpop.eup %1668  ;;  %1678 = vrsqrt.f32 %v2073_v7  ;;  %vm961_vm14 = vcmp.eq.f32.partialorder %v2073_v7, inf  ;;  %vm963_vm15 = vcmp.eq.f32.partialorder %v2073_v7, 0.0  ;;  %vm954_vm1 = vcmp.eq.f32.partialorder %v2071_v4, inf }
  0xb9   : > { %v913_v12 = vsel %vm912_vm2, %v864_v59, %v911_v5  ;;  %1680 = vrsqrt.f32 %v2071_v4  ;;  %v925_v20 = vmul.f32 %v1669_v10, %v870_v58  ;;  %vm956_vm2 = vcmp.eq.f32.partialorder %v2071_v4, 0.0 }
  0xba   : > { %v1671_v11 = vpop.eup %1670  ;;  %v916_v21 = vsel %vm914_vm3, %v915_v14, %v913_v12  ;;  %v957_v14 = vand.u32 2147483648, %v2071_v4 }
  0xbb   : > { %v1673_v13 = vpop.eup %1672  ;;  %v932_v15 = vmul.f32 %v1671_v11, %v873_v60  ;;  %v2076_v18 = vpop.xlane.xlu0 %887  ;;  %v1022_v36 = vmax.f32 %v916_v21, 1e-12  ;;  %v927_v39 = vsel %vm926_vm8, %v870_v58, %v925_v20 }
  0xbc   : > { %v918_v19 = vmul.f32 %v1673_v13, %v867_v61  ;;  %v2081_v38 = vpop.xlane.xlu1 %890  ;;  %v930_v51 = vsel %vm928_vm9, %v929_v43, %v927_v39 }
  0xbd   : > { %v934_v24 = vsel %vm933_vm4, %v873_v60, %v932_v15  ;;  %1682 = vrsqrt.f32 %v2081_v38  ;;  %v1024_v58 = vmax.f32 %v930_v51, 1e-12  ;;  %vm975_vm3 = vcmp.eq.f32.partialorder %v2081_v38, inf }
  0xbe   : > { %v920_v27 = vsel %vm919_vm5, %v867_v61, %v918_v19  ;;  %v1675_v30 = vpop.eup %1674  ;;  %v937_v37 = vsel %vm935_vm7, %v936_v26, %v934_v24  ;;  %1684 = vrsqrt.f32 %v2076_v18  ;;  %vm968_vm4 = vcmp.eq.f32.partialorder %v2076_v18, inf }
  0xbf   : > { %v923_v31 = vsel %vm921_vm6, %v922_v25, %v920_v27  ;;  %v2079_v32 = vpop.xlane.xlu0 %893  ;;  %v1677_v33 = vpop.eup %1676  ;;  %v946_v44 = vmul.f32 %v1675_v30, %v2065_v62  ;;  %v1025_v48 = vmax.f32 %v937_v37, 1e-12  ;;  %1686 = vrcp.f32 %v1022_v36 }
  0xc0   : > { %v1023_v42 = vmax.f32 %v923_v31, 1e-12  ;;  %v939_v49 = vmul.f32 %v1677_v33, %v2067_v63  ;;  %v2099_v60 = vpop.xlane.xlu1 %896  ;;  %vm977_vm5 = vcmp.eq.f32.partialorder %v2081_v38, 0.0  ;;  %v971_v36 = vand.u32 2147483648, %v2076_v18 }
  0xc1   : > { %v948_v55 = vsel %vm947_vm10, %v2065_v62, %v946_v44  ;;  %v964_v62 = vand.u32 2147483648, %v2073_v7  ;;  %vm970_vm6 = vcmp.eq.f32.partialorder %v2076_v18, 0.0  ;;  %vm989_vm7 = vcmp.eq.f32.partialorder %v2099_v60, inf }
  0xc2   : > { %v1679_v45 = vpop.eup %1678  ;;  %1688 = vrcp.f32 %v1023_v42  ;;  %v941_v59 = vsel %vm940_vm11, %v2067_v63, %v939_v49  ;;  %v951_v3 = vsel %vm949_vm12, %v950_v52, %v948_v55  ;;  %vm991_vm8 = vcmp.eq.f32.partialorder %v2099_v60, 0.0 }
  0xc3   : > { %v2088_v50 = vpop.xlane.xlu0 %899  ;;  %v1681_v53 = vpop.eup %1680  ;;  %v960_v57 = vmul.f32 %v1679_v45, %v2073_v7  ;;  %1690 = vrcp.f32 %v1025_v48  ;;  %v944_v10 = vsel %vm942_vm13, %v943_v56, %v941_v59  ;;  %v1027_v13 = vmax.f32 %v951_v3, 1e-12 }
  0xc4   : > { %1692 = vrsqrt.f32 %v2099_v60  ;;  %v953_v5 = vmul.f32 %v1681_v53, %v2071_v4  ;;  %v1026_v19 = vmax.f32 %v944_v10, 1e-12  ;;  %vm982_vm9 = vcmp.eq.f32.partialorder %v2079_v32, inf }
  0xc5   : > { %1694 = vrsqrt.f32 %v2079_v32  ;;  %v962_v11 = vsel %vm961_vm14, %v2073_v7, %v960_v57  ;;  %v2116_v7 = vpop.xlane.xlu1 %902  ;;  %v992_v57 = vand.u32 2147483648, %v2099_v60  ;;  %vm984_vm10 = vcmp.eq.f32.partialorder %v2079_v32, 0.0 }
  0xc6   : > { %1696 = vrcp.f32 %v1024_v58  ;;  %v965_v20 = vsel %vm963_vm15, %v964_v62, %v962_v11  ;;  %v955_v21 = vsel %vm954_vm1, %v2071_v4, %v953_v5  ;;  %v978_v4 = vand.u32 2147483648, %v2081_v38 }
  0xc7   : > { %v2101_v61 = vpop.xlane.xlu0 %905  ;;  %v1683_v63 = vpop.eup %1682  ;;  %v1029_v30 = vmax.f32 %v965_v20, 1e-12  ;;  %v958_v31 = vsel %vm956_vm2, %v957_v14, %v955_v21  ;;  %v985_v58 = vand.u32 2147483648, %v2079_v32  ;;  %vm1003_vm13 = vcmp.eq.f32.partialorder %v2116_v7, inf }
  0xc8   : > { %v1685_v12 = vpop.eup %1684  ;;  %v974_v25 = vmul.f32 %v1683_v63, %v2081_v38  ;;  %v1028_v45 = vmax.f32 %v958_v31, 1e-12  ;;  %vm1005_vm14 = vcmp.eq.f32.partialorder %v2116_v7, 0.0  ;;  %vm996_vm15 = vcmp.eq.f32.partialorder %v2088_v50, inf }
  0xc9   : > { %v1687_v24 = vpop.eup %1686  ;;  %v967_v27 = vmul.f32 %v1685_v12, %v2076_v18  ;;  %v2133_v49 = vpop.xlane.xlu1 %908  ;;  %vm998_vm1 = vcmp.eq.f32.partialorder %v2088_v50, 0.0 }
  0xca   : > { %v976_v39 = vsel %vm975_vm3, %v2081_v38, %v974_v25  ;;  %v1057_v42 = vmul.f32 %v1687_v24, %v1935_v1  ;;  %vm1017_vm2 = vcmp.eq.f32.partialorder %v2133_v49, inf  ;;  %vm1019_vm3 = vcmp.eq.f32.partialorder %v2133_v49, 0.0 }
  0xcb   : > { %v2111_v15 = vpop.xlane.xlu0 %401  ;;  %v969_v48 = vsel %vm968_vm4, %v2076_v18, %v967_v27  ;;  %v979_v1 = vsel %vm977_vm5, %v978_v4, %v976_v39  ;;  %vm1010_vm4 = vcmp.eq.f32.partialorder %v2101_v61, inf  ;;  %vm1012_vm5 = vcmp.eq.f32.partialorder %v2101_v61, 0.0 }
  0xcc   : > { %v1689_v26 = vpop.eup %1688  ;;  %1698 = vrsqrt.f32 %v2111_v15  ;;  %v972_v53 = vsel %vm970_vm6, %v971_v36, %v969_v48  ;;  %v1031_v38 = vmax.f32 %v979_v1, 1e-12  ;;  %vm408_vm11 = vcmp.eq.f32.partialorder %v2111_v15, inf }
  0xcd   : > { %1700 = vrcp.f32 %v1027_v13  ;;  %v1691_v33 = vpop.eup %1690  ;;  %v1058_v43 = vmul.f32 %v1689_v26, %v1953_v6  ;;  %v1030_v62 = vmax.f32 %v972_v53, 1e-12  ;;  %v411_v5 = vand.u32 2147483648, %v2111_v15 }
  0xce   : > { %1702 = vrcp.f32 %v1026_v19  ;;  %v1693_v37 = vpop.eup %1692  ;;  %v1060_v56 = vmul.f32 %v1691_v33, %v1938_v2  ;;  %vm410_vm12 = vcmp.eq.f32.partialorder %v2111_v15, 0.0  ;;  %v1020_v48 = vand.u32 2147483648, %v2133_v49 }
  0xcf   : > { %1704 = vrsqrt.f32 %v2116_v7  ;;  %v1695_v44 = vpop.eup %1694  ;;  %v1073_v51 = vpack.c.bf16 %v1058_v43, %v1057_v42  ;;  %v988_v6 = vmul.f32 %v1693_v37, %v2099_v60 }
  0xd0   : > { %1706 = vrsqrt.f32 %v2088_v50  ;;  %v1697_v52 = vpop.eup %1696  ;;  %v981_v18 = vmul.f32 %v1695_v44, %v2079_v32  ;;  %v999_v44 = vand.u32 2147483648, %v2088_v50 }
  0xd1   : > { %1708 = vrcp.f32 %v1029_v30  ;;  %v1085_v55 = vsel %vm399_vm0, %v1073_v51, 0  ;;  %v1059_v59 = vmul.f32 %v1697_v52, %v1932_v0  ;;  %v990_v2 = vsel %vm989_vm7, %v2099_v60, %v988_v6  ;;  %v2170_v60 = vpop.xlane.xlu1 %404 }
  0xd2   : > { %1710 = vrsqrt.f32 %v2133_v49  ;;  %1571 = vmatpush3.bf16.xpose.msra.mxu0 %v1085_v55  ;;  %v983_v11 = vsel %vm982_vm9, %v2079_v32, %v981_v18  ;;  %v993_v20 = vsel %vm991_vm8, %v992_v57, %v990_v2  ;;  %vm415_vm7 = vcmp.eq.f32.partialorder %v2170_v60, inf }
  0xd3   : > { %1712 = vrcp.f32 %v1028_v45  ;;  %1572 = vmatprep.subr.bf16.mxu0 %v1810_v54  ;;  %v1074_v12 = vpack.c.bf16 %v1060_v56, %v1059_v59  ;;  %v986_v21 = vsel %vm984_vm10, %v985_v58, %v983_v11  ;;  %v1033_v33 = vmax.f32 %v993_v20, 1e-12 }
  0xd4   : > { %1714 = vrsqrt.f32 %v2101_v61  ;;  %v1032_v36 = vmax.f32 %v986_v21, 1e-12  ;;  %vm417_vm8 = vcmp.eq.f32.partialorder %v2170_v60, 0.0 }
  0xd5   : > { %1716 = vrcp.f32 %v1031_v38  ;;  %v1088_v27 = vsel %vm399_vm0, %v1074_v12, 0 }
  0xd6   : > { %v1699_v3 = vpop.eup %1698  ;;  %1718 = vrcp.f32 %v1030_v62 }
  0xd7   : > { %v1701_v10 = vpop.eup %1700  ;;  %v407_v63 = vmul.f32 %v1699_v3, %v2111_v15  ;;  %1720 = vrsqrt.f32 %v2170_v60 }
  0xd8   : > { %v1703_v13 = vpop.eup %1702  ;;  %v1062_v31 = vmul.f32 %v1701_v10, %v1970_v8  ;;  %v1006_v8 = vand.u32 2147483648, %v2116_v7  ;;  %1722 = vrcp.f32 %v1033_v33 }
  0xd9   : > { %v1705_v0 = vpop.eup %1704  ;;  %v409_v14 = vsel %vm408_vm11, %v2111_v15, %v407_v63  ;;  %v1061_v30 = vmul.f32 %v1703_v13, %v1973_v9  ;;  %1724 = vrcp.f32 %v1032_v36 }
  0xda   : > { %v1707_v19 = vpop.eup %1706  ;;  %v2163_v24 = vsel %vm410_vm12, %v411_v5, %v409_v14  ;;  %1573 = vmatpush3.bf16.xpose.msra.mxu0 %v1088_v27  ;;  %v1002_v37 = vmul.f32 %v1705_v0, %v2116_v7 }
  0xdb   : > { %v1709_v25 = vpop.eup %1708  ;;  %v424_v26 = vmax.f32 %v2163_v24, 0.0  ;;  %1574 = vmatprep.subr.bf16.mxu0 %v1810_v54  ;;  %v995_v9 = vmul.f32 %v1707_v19, %v2088_v50  ;;  %v1075_v43 = vpack.c.bf16 %v1062_v31, %v1061_v30 }
  0xdc   : > { %v1711_v15 = vpop.eup %1710  ;;  %v1004_v52 = vsel %vm1003_vm13, %v2116_v7, %v1002_v37  ;;  %v1064_v57 = vmul.f32 %v1709_v25, %v1984_v16  ;;  %v1013_v16 = vand.u32 2147483648, %v2101_v61  ;;  %v1814_v37 = vmov 2475754826  }
  0xdd   : > { %v426_v32 = vmin.f32 %v424_v26, 90.0  ;;  %v1713_v4 = vpop.eup %1712  ;;  %v1016_v45 = vmul.f32 %v1711_v15, %v2133_v49  ;;  %v997_v1 = vsel %vm996_vm15, %v2088_v50, %v995_v9  ;;  %v1091_v55 = vsel %vm399_vm0, %v1075_v43, 0 }
  0xde   : > { %v1715_v39 = vpop.eup %1714  ;;  %v1063_v56 = vmul.f32 %v1713_v4, %v1987_v17  ;;  %v1007_v59 = vsel %vm1005_vm14, %v1006_v8, %v1004_v52  ;;  %v1000_v62 = vsel %vm998_vm1, %v999_v44, %v997_v1  ;;  %v1813_v4 = vmov 683565275  }
  0xdf   : > { %v428_v42 = vmul.f32 0.0044444446, %v426_v32  ;;  %v1009_v6 = vmul.f32 %v1715_v39, %v2101_v61  ;;  %v1717_v53 = vpop.eup %1716  ;;  %v1018_v58 = vsel %vm1017_vm2, %v2133_v49, %v1016_v45  ;;  %v1035_v11 = vmax.f32 %v1007_v59, 1e-12 }
  0xe0   : > { %v1719_v38 = vpop.eup %1718  ;;  %v1021_v2 = vsel %vm1019_vm3, %v1020_v48, %v1018_v58  ;;  %v1076_v10 = vpack.c.bf16 %v1064_v57, %v1063_v56  ;;  %v1066_v63 = vmul.f32 %v1717_v53, %v1996_v22  ;;  %v1034_v12 = vmax.f32 %v1000_v62, 1e-12 }
  0xe1   : > { %v2184_v51 = vadd.f32 0.35, %v428_v42  ;;  %v1011_v49 = vsel %vm1010_vm4, %v2101_v61, %v1009_v6  ;;  %v1065_v7 = vmul.f32 %v1719_v38, %v1999_v23  ;;  %v1721_v50 = vpop.eup %1720  ;;  %v1037_v0 = vmax.f32 %v1021_v2, 1e-12 }
  0xe2   : > { %1575 = vmatpush3.bf16.xpose.msra.mxu0 %v1091_v55  ;;  %v1014_v14 = vsel %vm1012_vm5, %v1013_v16, %v1011_v49  ;;  %v1723_v20 = vpop.eup %1722  ;;  %v1094_v21 = vsel %vm399_vm0, %v1076_v10, 0  ;;  %1726 = vrcp.f32 %v1035_v11  ;;  %v418_v23 = vand.u32 2147483648, %v2170_v60 }
  0xe3   : > { %v435_v18 = vand.u32 2139095040, %v2184_v51  ;;  %1576 = vmatprep.subr.bf16.mxu0 %v1810_v54  ;;  %v432_v17 = vand.u32 2147483647, %v2184_v51  ;;  %v1725_v61 = vpop.eup %1724  ;;  %v1077_v22 = vpack.c.bf16 %v1066_v63, %v1065_v7  ;;  %1728 = vrcp.f32 %v1034_v12 }
  0xe4   : > { %v1036_v26 = vmax.f32 %v1014_v14, 1e-12  ;;  %v414_v27 = vmul.f32 %v1721_v50, %v2170_v60  ;;  %1730 = vrcp.f32 %v1037_v0  ;;  %v1068_v15 = vmul.f32 %v1723_v20, %v2008_v28 }
  0xe5   : > { %v436_v3 = vshrl.u32 %v435_v18, 23  ;;  %v439_v19 = vand.u32 8388607, %v432_v17  ;;  %v1815_v39 = vmov 2131351028   ;;  %v1097_v42 = vsel %vm399_vm0, %v1077_v22, 0 }
  0xe6   : > { %v1067_v43 = vmul.f32 %v1725_v61, %v2011_v29  ;;  %v1816_v44 = vmov 2102212464   ;;  %v1817_v45 = vmov 920167782   ;;  %v1818_v55 = vmov 1326507024  }
  0xe7   : > { %v1524_v5 = vadd.s32 4294967169, %v436_v3  ;;  %v440_v33 = vor.u32 8388608, %v439_v19  ;;  %1732 = vrcp.f32 %v1036_v26  ;;  %v416_v12 = vsel %vm415_vm7, %v2170_v60, %v414_v27 }
  0xe8   : > { %v2248_v27 = vsel %vm417_vm8, %v418_v23, %v416_v12  ;;  %vm434_vm15 = vcmp.lt.s32.totalorder %v2184_v51, 0  ;;  %vm524_vm7 = vweird.f32 %v2184_v51 }
  0xe9   : > { %v442_v13 = vadd.s32 1, %v1524_v5  ;;  %v480_v29 = vshll.u32 %v440_v33, 8 }
  0xea   : > { %1577 = vmatpush3.bf16.xpose.msra.mxu0 %v1094_v21 }
  0xeb   : > { %vm443_vm6 = vcmp.gt.s32.totalorder %v442_v13, 0  ;;  %1578 = vmatprep.subr.bf16.mxu0 %v1810_v54 }
  0xec   : > { %v444_v25 = vsel %vm443_vm6, %v442_v13, 0  ;;  %v1727_v5 = vpop.eup %1726  ;;  %v1078_v13 = vpack.c.bf16 %v1068_v15, %v1067_v43 }
  0xed   : > { %v446_v30 = vand.u32 31, %v444_v25  ;;  %v445_v31 = vshrl.u32 %v444_v25, 5  ;;  %v1729_v63 = vpop.eup %1728 }
  0xee   : > { %v1731_v14 = vpop.eup %1730  ;;  %v1100_v15 = vsel %vm399_vm0, %v1078_v13, 0  ;;  %v1069_v33 = vmul.f32 %v1729_v63, %v2023_v35 }
  0xef   : > { %v447_v32 = vsub.s32 32, %v446_v30  ;;  %v449_v36 = vshll.u32 %v1813_v4, %v446_v30  ;;  %v452_v9 = vshll.u32 %v1814_v37, %v446_v30  ;;  %v455_v8 = vshll.u32 %v1815_v39, %v446_v30 }
  0xf0   : > { %v458_v28 = vshll.u32 %v1816_v44, %v446_v30  ;;  %v461_v48 = vshll.u32 %v1817_v45, %v446_v30  ;;  %vm464_vm9 = vcmp.lt.s32.totalorder %v445_v31, 1  ;;  %vm467_vm10 = vcmp.lt.s32.totalorder %v445_v31, 4 }
  0xf1   : > { %v448_v52 = vshrl.u32 %v1813_v4, %v447_v32  ;;  %v450_v1 = vshrl.u32 %v1814_v37, %v447_v32  ;;  %v453_v6 = vshrl.u32 %v1815_v39, %v447_v32  ;;  %v456_v53 = vshrl.u32 %v1816_v44, %v447_v32 }
  0xf2   : > { %v459_v18 = vshrl.u32 %v1817_v45, %v447_v32  ;;  %v462_v56 = vshrl.u32 %v1818_v55, %v447_v32  ;;  %1579 = vmatpush3.bf16.xpose.msra.mxu0 %v1097_v42  ;;  %vm465_vm11 = vcmp.lt.s32.totalorder %v445_v31, 2  ;;  %vm466_vm12 = vcmp.lt.s32.totalorder %v445_v31, 3 }
  0xf3   : > { %v451_v57 = vor.u32 %v450_v1, %v449_v36  ;;  %v454_v38 = vor.u32 %v453_v6, %v452_v9  ;;  %v457_v58 = vor.u32 %v456_v53, %v455_v8  ;;  %1580 = vmatprep.subr.bf16.mxu0 %v1810_v54  ;;  %v421_v30 = vmax.f32 %v2248_v27, 1e-12  ;;  %v1733_v8 = vpop.eup %1732 }
  0xf4   : > { %v460_v59 = vor.u32 %v459_v18, %v458_v28  ;;  %v463_v3 = vor.u32 %v462_v56, %v461_v48  ;;  %v1070_v31 = vmul.f32 %v1727_v5, %v2020_v34  ;;  %v420_v32 = vmax.f32 %v2163_v24, 1e-12 }
  0xf5   : > { %v468_v62 = vsel %vm464_vm9, %v448_v52, %v451_v57  ;;  %v469_v16 = vsel %vm467_vm10, %v457_v58, 2102212464  ;;  %v472_v2 = vsel %vm464_vm9, %v451_v57, %v454_v38  ;;  %v476_v49 = vsel %vm464_vm9, %v454_v38, %v457_v58 }
  0xf6   : > { %v470_v10 = vsel %vm466_vm12, %v454_v38, %v469_v16  ;;  %v473_v11 = vsel %vm467_vm10, %v460_v59, 920167782  ;;  %v477_v7 = vsel %vm467_vm10, %v463_v3, 1326507024  ;;  %1734 = vrcp.f32 %v421_v30 }
  0xf7   : > { %v474_v50 = vsel %vm466_vm12, %v457_v58, %v473_v11  ;;  %v478_v0 = vsel %vm466_vm12, %v460_v59, %v477_v7  ;;  %v471_v19 = vsel %vm465_vm11, %v468_v62, %v470_v10  ;;  %v1079_v23 = vpack.c.bf16 %v1070_v31, %v1069_v33 }
  0xf8   : > { %v475_v20 = vsel %vm465_vm11, %v472_v2, %v474_v50  ;;  %v479_v21 = vsel %vm465_vm11, %v476_v49, %v478_v0  ;;  %v487_v36 = vmul.u32 %v480_v29, %v471_v19  ;;  %1736 = vrcp.f32 %v420_v32 }
  0xf9   : > { %v2238_v61 = vmul.u32.u64.low %v480_v29, %v479_v21  ;;  %v2239_v25 = vmul.u32.u64.high %v480_v29, %v479_v21, %v2238_v61  ;;  %v2241_v22 = vmul.u32.u64.low %v480_v29, %v475_v20  ;;  %v2242_v26 = vmul.u32.u64.high %v480_v29, %v475_v20, %v2241_v22 }
  0xfa   : > { %1581 = vmatpush3.bf16.xpose.msra.mxu0 %v1100_v15  ;;  %v1103_v34 = vsel %vm399_vm0, %v1079_v23, 0  ;;  %v1071_v24 = vmul.f32 %v1733_v8, %v2035_v41  ;;  %v1072_v43 = vmul.f32 %v1731_v14, %v2032_v40 }
  0xfb   : > { %1582 = vmatprep.subr.bf16.mxu0 %v1810_v54  ;;  %vm489_vm13 = vc.u32 %v2239_v25, %v2241_v22  ;;  %v490_v60 = vadd.s32 1, %v2242_v26  ;;  %v488_v3 = vadd.s32 %v2241_v22, %v2239_v25 }
  0xfc   : > { %v1080_v52 = vpack.c.bf16 %v1072_v43, %v1071_v24  ;;  %v1156_v24 = vpop.permute.xlu0 %1155  ;;  %v1159_v43 = vpop.permute.xlu1 %1158 }
  0xfd   : > { %v491_v9 = vsel %vm489_vm13, %v490_v60, %v2242_v26 }
  0xfe   : > { %v492_v42 = vadd.s32 %v491_v9, %v487_v36  ;;  %v1106_v56 = vsel %vm399_vm0, %v1080_v52, 0  ;;  %v1149_v9 = vlaneseq }
 0x100   : > { %v493_v35 = vadd.s32 536870912, %v492_v42  ;;  %v1735_v6 = vpop.eup %1734  ;;  %v1150_v8 = vand.u32 127, %v1149_v9 }
 0x101   : > { %v1055_v41 = vmul.f32 %v1735_v6, %v2047_v46 }
 0x102   : > { %1583 = vmatpush3.bf16.xpose.msra.mxu0 %v1103_v34  ;;  %v494_v28 = vshrl.u32 %v493_v35, 30  ;;  %v1737_v53 = vpop.eup %1736  ;;  %v425_v34 = vmax.f32 %v2248_v27, 0.0 }
 0x103   : > { %1584 = vmatprep.subr.bf16.mxu0 %v1810_v54  ;;  %v1054_v57 = vmul.f32 %v1737_v53, %v2049_v47 }
 0x104   : > { %v495_v48 = vshll.u32 %v494_v28, 30  ;;  %v518_v12 = vsub.s32 4, %v494_v28 }
 0x105   : > { %v1056_v58 = vpack.c.bf16 %v1055_v41, %v1054_v57 }
 0x106   : > { %v496_v1 = vsub.s32 %v492_v42, %v495_v48  ;;  %v519_v0 = vsel %vm434_vm15, %v518_v12, %v494_v28  ;;  %v1152_v42 = vstv %s1541_s24  ;;  %v427_v28 = vmin.f32 %v425_v34, 90.0 }
 0x107   : > { %v1153_v35 = vadd.s32 %v1152_v42, %v1150_v8  ;;  %v1204_v48 = vstv %s376_s15 }
 0x108   : > { %v498_v18 = vsub.s32 0, %v496_v1  ;;  %v429_v52 = vmul.f32 0.0044444446, %v427_v28 }
 0x109   : > { %vm1160_vm8 = vcmp.eq.s32.totalorder %v1153_v35, %v1156_v24  ;;  %vm1161_vm9 = vcmp.eq.s32.totalorder %v1153_v35, %v1159_v43 }
 0x10a   : > { %1585 = vmatpush3.bf16.xpose.msra.mxu0 %v1106_v56  ;;  %v1525_v29 = vmin.u32 %v498_v18, %v496_v1 }
 0x10c   : > { %v500_v38 = vclz %v1525_v29 }
 0x10e   : > { %v1526_v40 = vadd.s32 4294967294, %v500_v38 }
 0x110   : > { %vm1527_vm14 = vcmp.lt.s32.totalorder %v1526_v40, 0 }
 0x111   : > { %1587 = vmatmul.mubr.msk.bf16.vlgmr.msra.gmra.mrb[0].mxu0 %vm399_vm0, %v1056_v58  ;;  %v503_v59 = vsel %vm1527_vm14, 0, %v1526_v40  ;;  %vm433_vm0 = vcmp.le.f32.partialorder %v432_v17, 0.7853982 }
 0x112   : > { %v504_v62 = vsub.s32 32, %v503_v59  ;;  %v508_v16 = vsub.s32 4294967266, %v503_v59  ;;  %v505_v2 = vshll.u32 %v496_v1, %v503_v59  ;;  %v521_v19 = vsel %vm433_vm0, 0, %v519_v0 }
 0x113   : > { %v731_v20 = vadd.s32 3, %v521_v19  ;;  %v525_v21 = vand.u32 3, %v521_v19  ;;  %v2283_v1 = vsel %vm1161_vm9, 1.0, %v1810_v54 }
 0x114   : > { %v506_v49 = vshrl.u32 %v488_v3, %v504_v62  ;;  %v509_v5 = vadd.s32 127, %v508_v16 }
 0x115   : > { %v732_v61 = vand.u32 3, %v731_v20  ;;  %vm530_vm1 = vcmp.eq.s32.totalorder %v525_v21, 2  ;;  %vm527_vm3 = vcmp.eq.s32.totalorder %v525_v21, 0  ;;  %vm526_vm5 = vcmp.lt.s32.totalorder %v525_v21, 2 }
 0x116   : > { %v507_v10 = vor.u32 %v506_v49, %v505_v2  ;;  %v510_v11 = vshll.u32 %v509_v5, 23 }
 0x117   : > { %vm737_vm2 = vcmp.eq.s32.totalorder %v732_v61, 2  ;;  %vm734_vm4 = vcmp.eq.s32.totalorder %v732_v61, 0  ;;  %vm733_vm6 = vcmp.lt.s32.totalorder %v732_v61, 2 }
 0x118   : > { %v511_v7 = vor.u32 4788187, %v510_v11  ;;  %v514_v63 = vcvt.s32.f32 %v507_v10 }
 0x11a   : > { %v512_v47 = vand.u32 2147483647, %v511_v7 }
 0x11c   : > { %v515_v46 = vmul.f32 %v514_v63, %v512_v47 }
 0x11e   : > { %v516_v13 = vxor.u32 2147483648, %v515_v46 }
 0x120   : > { %v517_v50 = vsel %vm434_vm15, %v516_v13, %v515_v46 }
 0x121   : > { %v520_v14 = vsel %vm433_vm0, %v2184_v51, %v517_v50  ;;  %v2280_v51 = vsel %vm1160_vm8, 1.0, %v1810_v54  ;;  %v2295_v54 = vadd.f32 0.35, %v429_v52 }
 0x122   : > { %1738 = vcosq.f32 %v520_v14 }
 0x123   : > { %1740 = vsinq.f32 %v520_v14  ;;  %v538_v58 = vand.u32 2139095040, %v2295_v54  ;;  %v535_v63 = vand.u32 2147483647, %v2295_v54 }
 0x125   : > { %v539_v59 = vshrl.u32 %v538_v58, 23  ;;  %v542_v61 = vand.u32 8388607, %v535_v63 }
 0x127   : > { %v1528_v62 = vadd.s32 4294967169, %v539_v59 }
 0x129   : > { %v545_v2 = vadd.s32 1, %v1528_v62 }
 0x12b   : > { %vm546_vm10 = vcmp.gt.s32.totalorder %v545_v2, 0 }
 0x12c   : > { %v1739_v25 = vpop.eup %1738  ;;  %v547_v49 = vsel %vm546_vm10, %v545_v2, 0 }
 0x12d   : > { %v1741_v22 = vpop.eup %1740  ;;  %v531_v26 = vxor.u32 2147483648, %v1739_v25  ;;  %v549_v5 = vand.u32 31, %v547_v49  ;;  %v548_v47 = vshrl.u32 %v547_v49, 5 }
 0x12e   : > { %v528_v30 = vxor.u32 2147483648, %v1741_v22 }
 0x12f   : > { %v532_v15 = vsel %vm530_vm1, %v531_v26, %v1741_v22  ;;  %v739_v17 = vsel %vm737_vm2, %v531_v26, %v1741_v22  ;;  %v550_v10 = vsub.s32 32, %v549_v5  ;;  %v561_v11 = vshll.u32 %v1816_v44, %v549_v5 }
 0x130   : > { %v529_v33 = vsel %vm527_vm3, %v1739_v25, %v528_v30  ;;  %v736_v31 = vsel %vm734_vm4, %v1739_v25, %v528_v30  ;;  %v564_v46 = vshll.u32 %v1817_v45, %v549_v5  ;;  %v552_v13 = vshll.u32 %v1813_v4, %v549_v5 }
 0x131   : > { %v533_v32 = vsel %vm526_vm5, %v529_v33, %v532_v15  ;;  %v740_v36 = vsel %vm733_vm6, %v736_v31, %v739_v17  ;;  %v562_v7 = vshrl.u32 %v1817_v45, %v550_v10  ;;  %v565_v12 = vshrl.u32 %v1818_v55, %v550_v10 }
 0x132   : > { %v2273_v60 = vsel %vm524_vm7, nan, %v533_v32  ;;  %v2275_v23 = vsel %vm524_vm7, nan, %v740_v36  ;;  %v555_v50 = vshll.u32 %v1814_v37, %v549_v5  ;;  %v553_v0 = vshrl.u32 %v1814_v37, %v550_v10 }
 0x133   : > { %v556_v14 = vshrl.u32 %v1815_v39, %v550_v10  ;;  %v558_v19 = vshll.u32 %v1815_v39, %v549_v5  ;;  %v559_v20 = vshrl.u32 %v1816_v44, %v550_v10  ;;  %v563_v21 = vor.u32 %v562_v7, %v561_v11 }
 0x134   : > { %v566_v25 = vor.u32 %v565_v12, %v564_v46  ;;  %vm570_vm11 = vcmp.lt.s32.totalorder %v548_v47, 4  ;;  %v554_v45 = vor.u32 %v553_v0, %v552_v13  ;;  %vm567_vm12 = vcmp.lt.s32.totalorder %v548_v47, 1 }
 0x135   : > { %v557_v55 = vor.u32 %v556_v14, %v555_v50  ;;  %v560_v22 = vor.u32 %v559_v20, %v558_v19  ;;  %vm569_vm13 = vcmp.lt.s32.totalorder %v548_v47, 3  ;;  %v576_v26 = vsel %vm570_vm11, %v563_v21, 920167782 }
 0x136   : > { %v543_v37 = vor.u32 8388608, %v542_v61  ;;  %v580_v30 = vsel %vm570_vm11, %v566_v25, 1326507024  ;;  %vm568_vm14 = vcmp.lt.s32.totalorder %v548_v47, 2  ;;  %v551_v8 = vshrl.u32 %v1813_v4, %v550_v10 }
 0x137   : > { %v575_v39 = vsel %vm567_vm12, %v554_v45, %v557_v55  ;;  %v577_v44 = vsel %vm569_vm13, %v560_v22, %v576_v26  ;;  %v579_v15 = vsel %vm567_vm12, %v557_v55, %v560_v22  ;;  %v581_v17 = vsel %vm569_vm13, %v563_v21, %v580_v30 }
 0x138   : > { %v583_v33 = vshll.u32 %v543_v37, 8  ;;  %v578_v31 = vsel %vm568_vm14, %v575_v39, %v577_v44  ;;  %v582_v32 = vsel %vm568_vm14, %v579_v15, %v581_v17  ;;  %v572_v34 = vsel %vm570_vm11, %v560_v22, 2102212464 }
 0x139   : > { %v571_v24 = vsel %vm567_vm12, %v551_v8, %v554_v45  ;;  %v573_v43 = vsel %vm569_vm13, %v557_v55, %v572_v34  ;;  %vm537_vm1 = vcmp.lt.s32.totalorder %v2295_v54, 0  ;;  %vm536_vm2 = vcmp.le.f32.partialorder %v535_v63, 0.7853982 }
 0x13a   : > { %v2319_v36 = vmul.u32.u64.low %v583_v33, %v578_v31  ;;  %v2320_v9 = vmul.u32.u64.high %v583_v33, %v578_v31, %v2319_v36  ;;  %v2323_v42 = vmul.u32.u64.low %v583_v33, %v582_v32  ;;  %v2324_v35 = vmul.u32.u64.high %v583_v33, %v582_v32, %v2323_v42 }
 0x13b   : > { %v574_v28 = vsel %vm568_vm14, %v571_v24, %v573_v43  ;;  %vm627_vm12 = vweird.f32 %v2295_v54 }
 0x13c   : > { %vm592_vm15 = vc.u32 %v2324_v35, %v2319_v36  ;;  %v590_v52 = vmul.u32 %v583_v33, %v574_v28  ;;  %v591_v2 = vadd.s32 %v2319_v36, %v2324_v35 }
 0x1e4   : > { %v2285_v6 = vpop.f32.mrb[0].mxu0 }
 0x1e5   : > { %v1205_v53 = vmul.f32 %v1204_v48, %v2285_v6  ;;  %v1588_v18 = vpop.f32.mrb[1].mxu0  ;;  %v1166_v27 = vmul.f32 %v2280_v51, %v2285_v6 }
 0x1e6   : > { %v2290_v56 = vpop.f32.mrb[2].mxu0 }
 0x1e7   : > { %v1207_v29 = vmul.f32 1.442695, %v1205_v53  ;;  %v1206_v57 = vmul.f32 %v1204_v48, %v2290_v56  ;;  %v1589_v41 = vpop.f32.mrb[3].mxu0  ;;  %1168 = vadd.xlane.f32.xlu1 %v1166_v27  ;;  %v1167_v38 = vmul.f32 %v2283_v1, %v2290_v56  ;;  %v593_v48 = vadd.s32 1, %v2320_v9 }
 0x1e9   : > { %1742 = vpow2.f32 %v1207_v29  ;;  %v1209_v40 = vmul.f32 1.442695, %v1206_v57  ;;  %1170 = vadd.xlane.f32.xlu0 %v1167_v38  ;;  %v594_v53 = vsel %vm592_vm15, %v593_v48, %v2320_v9 }
 0x1ea   : > { %v595_v18 = vadd.s32 %v594_v53, %v590_v52 }
 0x1eb   : > { %1744 = vpow2.f32 %v1209_v40 }
 0x1ec   : > { %v596_v4 = vadd.s32 536870912, %v595_v18 }
 0x1ee   : > { %v597_v27 = vshrl.u32 %v596_v4, 30 }
 0x1f0   : > { %v598_v29 = vshll.u32 %v597_v27, 30  ;;  %v621_v20 = vsub.s32 4, %v597_v27 }
 0x1f2   : > { %v599_v57 = vsub.s32 %v595_v18, %v598_v29  ;;  %v622_v55 = vsel %vm537_vm1, %v621_v20, %v597_v27 }
 0x1f3   : > { %v1743_v3 = vpop.eup %1742  ;;  %v624_v37 = vsel %vm536_vm2, 0, %v622_v55 }
 0x1f4   : > { %1211 = vadd.xlane.f32.xlu1 %v1743_v3  ;;  %v601_v41 = vsub.s32 0, %v599_v57  ;;  %v835_v39 = vadd.s32 3, %v624_v37  ;;  %v628_v33 = vand.u32 3, %v624_v37 }
 0x1f5   : > { %v1745_v16 = vpop.eup %1744 }
 0x1f6   : > { %v1529_v38 = vmin.u32 %v601_v41, %v599_v57  ;;  %v836_v32 = vand.u32 3, %v835_v39  ;;  %vm633_vm3 = vcmp.eq.s32.totalorder %v628_v33, 2  ;;  %vm630_vm4 = vcmp.eq.s32.totalorder %v628_v33, 0 }
 0x1f7   : > { %vm629_vm9 = vcmp.lt.s32.totalorder %v628_v33, 2 }
 0x1f8   : > { %1213 = vadd.xlane.f32.xlu1 %v1745_v16  ;;  %v603_v40 = vclz %v1529_v38  ;;  %vm838_vm5 = vcmp.eq.s32.totalorder %v836_v32, 0  ;;  %vm841_vm6 = vcmp.eq.s32.totalorder %v836_v32, 2  ;;  %vm837_vm10 = vcmp.lt.s32.totalorder %v836_v32, 2 }
 0x1fa   : > { %v1530_v58 = vadd.s32 4294967294, %v603_v40 }
 0x1fc   : > { %vm1531_vm0 = vcmp.lt.s32.totalorder %v1530_v58, 0 }
 0x1fd   : > { %v606_v59 = vsel %vm1531_vm0, 0, %v1530_v58  ;;  %vm1235_vm0 = vcmask (!%p1546_p11), 7168  }
 0x1fe   : > { %v611_v3 = vsub.s32 4294967266, %v606_v59  ;;  %v607_v16 = vsub.s32 32, %v606_v59  ;;  %v608_v10 = vshll.u32 %v599_v57, %v606_v59 }
 0x200   : > { %v612_v62 = vadd.s32 127, %v611_v3  ;;  %v609_v5 = vshrl.u32 %v591_v2, %v607_v16 }
 0x202   : > { %v613_v49 = vshll.u32 %v612_v62, 23  ;;  %v610_v7 = vor.u32 %v609_v5, %v608_v10 }
 0x204   : > { %v614_v11 = vor.u32 4788187, %v613_v49  ;;  %v617_v46 = vcvt.s32.f32 %v610_v7 }
 0x206   : > { %v615_v47 = vand.u32 2147483647, %v614_v11 }
 0x208   : > { %v618_v12 = vmul.f32 %v617_v46, %v615_v47 }
 0x20a   : > { %v619_v13 = vxor.u32 2147483648, %v618_v12 }
 0x20c   : > { %v620_v50 = vsel %vm537_vm1, %v619_v13, %v618_v12 }
 0x20d   : > { %v623_v0 = vsel %vm536_vm2, %v2295_v54, %v620_v50 }
 0x20e   : > { %1746 = vcosq.f32 %v623_v0 }
 0x20f   : > { %1748 = vsinq.f32 %v623_v0 }
 0x218   : > { %v1747_v44 = vpop.eup %1746 }
 0x219   : > { %v1749_v15 = vpop.eup %1748  ;;  %v634_v31 = vxor.u32 2147483648, %v1747_v44 }
 0x21a   : > { %v631_v36 = vxor.u32 2147483648, %v1749_v15 }
 0x21b   : > { %v635_v42 = vsel %vm633_vm3, %v634_v31, %v1749_v15  ;;  %v843_v43 = vsel %vm841_vm6, %v634_v31, %v1749_v15 }
 0x21c   : > { %v632_v34 = vsel %vm630_vm4, %v1747_v44, %v631_v36  ;;  %v840_v24 = vsel %vm838_vm5, %v1747_v44, %v631_v36 }
 0x21d   : > { %v636_v18 = vsel %vm629_vm9, %v632_v34, %v635_v42  ;;  %v844_v4 = vsel %vm837_vm10, %v840_v24, %v843_v43 }
 0x21e   : > { %v637_v58 = vsel %vm627_vm12, nan, %v636_v18  ;;  %v845_v59 = vsel %vm627_vm12, nan, %v844_v4 }
 0x274   : > { %v2338_v14 = vpop.xlane.xlu1 %1168 }
 0x275   : > { %v1172_v19 = vmul.f32 %v2338_v14, %v2338_v14  ;;  %v1194_v29 = vmul.f32 %v2338_v14, %v2273_v60  ;;  %vm1200_vm14 = vcmp.gt.f32.partialorder %v2338_v14, 0.0 }
 0x276   : > { %v2342_v21 = vpop.xlane.xlu0 %1170 }
 0x277   : > { %v1174_v61 = vsub.f32 1.0, %v1172_v19  ;;  %v1173_v25 = vmul.f32 %v2342_v21, %v2342_v21  ;;  %v1195_v62 = vmul.f32 %v2342_v21, %v637_v58  ;;  %vm1201_vm15 = vcmp.gt.f32.partialorder %v2342_v21, 0.0 }
 0x279   : > { %v1176_v45 = vmax.f32 %v1174_v61, 0.0  ;;  %v1175_v22 = vsub.f32 1.0, %v1173_v25 }
 0x27b   : > { %v1178_v63 = vmin.f32 %v1176_v45, 1.0  ;;  %v1177_v26 = vmax.f32 %v1175_v22, 0.0 }
 0x27d   : > { %1750 = vrsqrt.f32 %v1178_v63  ;;  %v1179_v30 = vmin.f32 %v1177_v26, 1.0  ;;  %vm1182_vm7 = vcmp.eq.f32.partialorder %v1178_v63, inf  ;;  %v1185_v28 = vand.u32 2147483648, %v1178_v63 }
 0x27e   : > { %vm1184_vm8 = vcmp.eq.f32.partialorder %v1178_v63, 0.0 }
 0x27f   : > { %1752 = vrsqrt.f32 %v1179_v30  ;;  %vm1189_vm11 = vcmp.eq.f32.partialorder %v1179_v30, inf  ;;  %v1192_v41 = vand.u32 2147483648, %v1179_v30  ;;  %vm1191_vm13 = vcmp.eq.f32.partialorder %v1179_v30, 0.0 }
 0x281   : > { %v2346_v17 = vpop.xlane.xlu1 %1211 }
 0x285   : > { %v2348_v9 = vpop.xlane.xlu1 %1213 }
 0x287   : > { %v1751_v8 = vpop.eup %1750 }
 0x288   : > { %v1181_v35 = vmul.f32 %v1751_v8, %v1178_v63 }
 0x289   : > { %v1753_v48 = vpop.eup %1752 }
 0x28a   : > { %v1183_v52 = vsel %vm1182_vm7, %v1178_v63, %v1181_v35  ;;  %v1188_v27 = vmul.f32 %v1753_v48, %v1179_v30 }
 0x28b   : > { %v1186_v53 = vsel %vm1184_vm8, %v1185_v28, %v1183_v52 }
 0x28c   : > { %v1196_v57 = vmul.f32 %v1186_v53, %v2275_v23  ;;  %v1190_v38 = vsel %vm1189_vm11, %v1179_v30, %v1188_v27 }
 0x28d   : > { %v1193_v3 = vsel %vm1191_vm13, %v1192_v41, %v1190_v38 }
 0x28e   : > { %v1198_v40 = vsub.f32 %v1194_v29, %v1196_v57  ;;  %v1197_v16 = vmul.f32 %v1193_v3, %v845_v59 }
 0x290   : > { %v1202_v60 = vsel %vm1200_vm14, %v1198_v40, %v2338_v14  ;;  %v1199_v2 = vsub.f32 %v1195_v62, %v1197_v16 }
 0x291   : > { %v1215_v23 = vsub.f32 %v1202_v60, %v2338_v14 }
 0x292   : > { %v1203_v49 = vsel %vm1201_vm15, %v1199_v2, %v2342_v21 }
 0x293   : > { %v1217_v54 = vmul.f32 %v2280_v51, %v1215_v23  ;;  %v1216_v5 = vsub.f32 %v1203_v49, %v2342_v21  ;;  %v1819_v51 = vmov (!%p1546_p11), 0.0  }
 0x294   : > { %1236 = vst.msk [vmem:[%s1944_s12] sm:$0xff] (!%p1546_p11), %vm1235_vm0, %v1819_v51  ;;  %1238 = vst.msk [vmem:[%s1959_s16] sm:$0xff] (!%p1546_p11), %vm1235_vm0, %v1819_v51 }
 0x295   : > { %v1219_v10 = vadd.f32 %v1217_v54, %v2285_v6  ;;  %v1218_v11 = vmul.f32 %v2283_v1, %v1216_v5  ;;  %1234 = sbr.rel (%p1546_p11) target bundleno = 668 (0x29c), region = 40  ;;  %1240 = vst.msk [vmem:[%s1965_s20] sm:$0xff] (!%p1546_p11), %vm1235_vm0, %v1819_v51  ;;  %1237 = vst.msk [vmem:[%s1944_s12 + $0x8] sm:$0xff] (!%p1546_p11), %vm1235_vm0, %v1819_v51 }
 0x296   : > { %1239 = vst.msk [vmem:[%s1959_s16 + $0x8] sm:$0xff] (!%p1546_p11), %vm1235_vm0, %v1819_v51  ;;  %1241 = vst.msk [vmem:[%s1965_s20 + $0x8] sm:$0xff] (!%p1546_p11), %vm1235_vm0, %v1819_v51 }
 0x297   : > { %v1220_v7 = vadd.f32 %v1218_v11, %v2290_v56 }
 0x299   : > { %v1559_v47 = vpack.c.bf16 %v1220_v7, %v1219_v10 }
 0x29b   : > { %1560 = vst [vmem:[%s2366_s21] sm:$0xff] %v1559_v47  }
 0x29c PF: > { %v1242_v1 = vld [vmem:[%s1944_s12] sm:$0xff]  ;;  %v1243_v6 = vld [vmem:[%s1944_s12 + $0x8] sm:$0xff]  ;;  %vm1246_vm1 = vcmask 7168   ;;  %1282 = sbr.rel (!%p1909_p5) target bundleno = 676 (0x2a4), region = 44  ;;  %s1555_s26 = sshll.u32 (%p1909_p5), %s1796_s29, 2 }
 0x29d   : > { %v1249_v56 = vld [vmem:[%s1959_s16] sm:$0xff]  ;;  %v1244_v46 = vadd.f32 %v1242_v1, %v2338_v14  ;;  %v1245_v12 = vadd.f32 %v1243_v6, %v2342_v21  ;;  %v1250_v13 = vld [vmem:[%s1959_s16 + $0x8] sm:$0xff]  ;;  %s1285_s22 = sadd.s32 (%p1909_p5), %s1792_s28, %s1555_s26 }
 0x29e   : > { %v1251_v50 = vadd.f32 %v1249_v56, %v1202_v60  ;;  %v1255_v0 = vld [vmem:[%s1965_s20] sm:$0xff]  ;;  %v1256_v19 = vld [vmem:[%s1965_s20 + $0x8] sm:$0xff]  ;;  %v1252_v20 = vadd.f32 %v1250_v13, %v1203_v49  ;;  %s1550_s25 = sshll.u32 (%p1909_p5), %s1285_s22, 2 }
 0x29f   : > { %v1257_v61 = vadd.f32 %v1255_v0, %v2346_v17  ;;  %v1258_v25 = vadd.f32 %v1256_v19, %v2348_v9  ;;  %1247 = vst.msk [vmem:[%s1944_s12] sm:$0xff] %vm1246_vm1, %v1244_v46  ;;  %1248 = vst.msk [vmem:[%s1944_s12 + $0x8] sm:$0xff] %vm1246_vm1, %v1245_v12 }
 0x2a0   : > { %1253 = vst.msk [vmem:[%s1959_s16] sm:$0xff] %vm1246_vm1, %v1251_v50  ;;  %1254 = vst.msk [vmem:[%s1959_s16 + $0x8] sm:$0xff] %vm1246_vm1, %v1252_v20  ;;  %s1287_s16 = scalar_lea.vmem (%p1909_p5), %s2432_s4, %s1550_s25 }
 0x2a1   : > { %1259 = vst.msk [vmem:[%s1965_s20] sm:$0xff] %vm1246_vm1, %v1257_v61  ;;  %1260 = vst.msk [vmem:[%s1965_s20 + $0x8] sm:$0xff] %vm1246_vm1, %v1258_v25 }
 0x2a2   : > { %v1303_v14 = vld [vmem:[%s2366_s21] sm:$0xf] (%p1909_p5)  ;;  %v1305_v21 = vld [vmem:[%s2366_s21 + $0x4] sm:$0xf] (%p1909_p5) }
 0x2a3   : > { %1304 = vst [vmem:[%s1287_s16] sm:$0xf] %v1303_v14  ;;  %1306 = vst [vmem:[%s1287_s16 + $0x8] sm:$0xf] %v1305_v21 }
 0x2a4 PF: > { %s19_s9 = sadd.s32 1, %s1808_s9   ;;  %s2437_s26 = smov %s1788_s27 }
 0x2a5   : > { %p16_p12 = scmp.ge.s32.totalorder %s19_s9, 6   ;;  %s2438_s27 = smov %s1920_s17 }
 0x2a6   : > { %s2439_s28 = smov %s1800_s30  ;;  %s2440_s29 = smov %s1804_s8 }
 0x2a7   : > { %s2441_s30 = smov %s2444_s0  ;;  %s2442_s8 = smov %s2448_s10 }
 0x2a8   :  { %18 = sbr.rel (!%p16_p12) target bundleno = 6 (0x6), region = 153 }

</bundles_post_ra>
